<compile_context>
chip_gen: v7x
topology: tpu7x:2x2x1
jax: 0.10.0
libtpu: 0.0.40
codegen_flags: <defaults>
</compile_context>

<pallas_src>
import functools

import jax
import jax.numpy as jnp
from jax.experimental import pallas as pl
from jax.experimental.pallas import tpu as pltpu

LN_EPS = 1e-5
NEG_INF = -1e30


def _layernorm(x, w, b, eps=LN_EPS):
    mu = jnp.mean(x, axis=-1, keepdims=True)
    var = jnp.mean((x - mu) ** 2, axis=-1, keepdims=True)
    return (x - mu) * jax.lax.rsqrt(var + eps) * w + b


def _gelu_exact(x):
    # torch F.gelu (erf form).  erf via Abramowitz & Stegun 7.1.26
    # (max abs error ~1.5e-7), built only from exp / mul / add / where so the
    # lowering is guaranteed on all TPU generations.
    z = jnp.abs(x) * 0.7071067811865476
    t = 1.0 / (1.0 + 0.3275911 * z)
    poly = ((((1.061405429 * t - 1.453152027) * t + 1.421413741) * t
             - 0.284496736) * t + 0.254829592) * t
    erf_abs = 1.0 - poly * jnp.exp(-z * z)
    erf = jnp.where(x >= 0, erf_abs, -erf_abs)
    return x * 0.5 * (1.0 + erf)


def fused_encoder_kernel(x_ref, inv_ref, kb_ref,
                         ln1w_ref, ln1b_ref,
                         wqkv_ref, bqkv_ref,
                         wo_ref, bo_ref,
                         ln2w_ref, ln2b_ref,
                         w1_ref, b1_ref, w2_ref, b2_ref,
                         o_ref,
                         *scratch,
                         num_heads, matmul_dtype, carry_in_out):
    l = pl.program_id(1)                      # layer index (innermost, sequential)
    Bt, T, D = x_ref.shape
    H = num_heads
    hd = D // H
    R = Bt * T

    # f32 activation carry, VMEM-resident across the layer axis.  When the
    # output dtype is f32 the carry lives directly in the resident output
    # block -> one fewer (Bt, T, D) buffer live for all L iterations.
    carry_ref = o_ref if carry_in_out else scratch[0]

    @pl.when(l == 0)
    def _():
        # Encoder-level padding multiply x *= (1 - pad), once per batch block.
        carry_ref[...] = x_ref[...].astype(jnp.float32) * inv_ref[...]

    x = carry_ref[...].astype(jnp.float32).reshape(R, D)

    def mm(a, w_ref, b_ref):                  # weights already in matmul_dtype
        return (jnp.dot(a.astype(matmul_dtype), w_ref[0],
                        preferred_element_type=jnp.float32) + b_ref[0])

    def split_heads(base):                    # qkv columns -> (Bt*H, T, hd)
        heads = [qkv[:, base + h * hd: base + (h + 1) * hd]
                 .astype(matmul_dtype).reshape(Bt, T, hd) for h in range(H)]
        return jnp.stack(heads, axis=1).reshape(Bt * H, T, hd)

    def merge_heads(m):                       # (Bt*H, T, hd) -> (R, D)
        m4 = m.reshape(Bt, H, T, hd)
        return jnp.concatenate([m4[:, h].reshape(R, hd) for h in range(H)],
                               axis=-1)

    # ---- self-attention block (pre-LN, alpha = 1.0) ----
    residual = x
    xn = _layernorm(x, ln1w_ref[0], ln1b_ref[0])
    qkv = mm(xn, wqkv_ref, bqkv_ref)          # (R, 3D); q-scale folded into Wq/bq
    q3 = split_heads(0)
    k3 = split_heads(D)
    v3 = split_heads(2 * D)

    scores = jnp.einsum('bqd,bkd->bqk', q3, k3,
                        preferred_element_type=jnp.float32)        # (Bt*H, T, T)
    # Additive key-padding bias broadcast over heads and query rows (no concat).
    scores = scores.reshape(Bt, H, T, T) + kb_ref[...]
    scores = scores - jnp.max(scores, axis=-1, keepdims=True)
    p = jnp.exp(scores)
    p = p * pl.reciprocal(jnp.sum(p, axis=-1, keepdims=True), approx=True)
    p3 = p.astype(matmul_dtype).reshape(Bt * H, T, T)
    ctx = jnp.einsum('bqk,bkd->bqd', p3, v3,
                     preferred_element_type=jnp.float32)           # (Bt*H, T, hd)
    attn = mm(merge_heads(ctx.astype(matmul_dtype)), wo_ref, bo_ref)
    x = residual + attn

    # ---- FFN block (pre-LN) ----
    residual = x
    xn = _layernorm(x, ln2w_ref[0], ln2b_ref[0])
    h1 = _gelu_exact(mm(xn, w1_ref, b1_ref)).astype(matmul_dtype)
    x = residual + mm(h1, w2_ref, b2_ref)

    carry_ref[...] = x.reshape(Bt, T, D)      # carry to next layer (stays in VMEM)

    if not carry_in_out:
        @pl.when(l == pl.num_programs(1) - 1)
        def _():
            o_ref[...] = x.reshape(Bt, T, D).astype(o_ref.dtype)


def _vmem_limit_bytes(batch_block, T, D, F, H, act_itemsize, w_itemsize,
                      carry_in_out, cap_bytes):
    """Footprint-derived scoped-VMEM limit (+30% headroom, 32 MiB floor)."""
    R = batch_block * T
    hd = D // H
    # Per-layer streamed weight block (double-buffered across the layer axis).
    w_block = (3 * D * D + D * D + D * F + F * D) * w_itemsize
    w_block += (3 * D + D + F + D + 4 * D) * 4              # biases + LN (f32)
    # Activation / mask blocks (double-buffered).
    a_block = batch_block * T * D * act_itemsize * 2 + batch_block * T * 4 * 2
    carry = 0 if carry_in_out else R * D * 4
    # In-kernel temporaries (upper bound): qkv, scores+probs, head tensors,
    # FFN hidden, residual/LN copies.
    tmp = (R * 3 * D) * 4 + 2 * (batch_block * H * T * T) * 4 \
        + 3 * (batch_block * H * T * hd) * w_itemsize \
        + R * F * 4 + R * F * w_itemsize + 2 * R * D * 4
    need = 2 * w_block + 2 * a_block + carry + tmp
    return int(min(max(need * 1.3, 32 * 1024 * 1024), cap_bytes))


def encoder_forward(token_embeddings, layer_params, num_heads, padding_mask=None,
                    batch_block=None, matmul_dtype=jnp.bfloat16,
                    vmem_cap_bytes=100 * 1024 * 1024):
    """Encoder.forward (eval mode, no embed_positions / attn_mask / rel_pos).

    Tuning notes:
      * v7x  : use batch_block = B // 2 (both TensorCores) and a ~56 MiB cap.
      * v6e  : keep batch_block = B (nb = 1) and raise the cap toward ~112 MiB.
      * v5e  : keep batch_block = B; bf16 weight streaming hides under MXU time.
    """
    B, T, D = token_embeddings.shape
    L = len(layer_params)
    F = layer_params[0]["w1"].shape[1]
    H = num_heads
    hd = D // H
    assert D % H == 0

    if padding_mask is None:
        padding_mask = jnp.zeros((B, T), jnp.float32)
    padding_mask = padding_mask.astype(jnp.float32)
    encoder_embedding = token_embeddings       # embed_scale = 1.0; dropout identity

    if batch_block is None:
        batch_block = B                        # whole batch per grid step
    assert B % batch_block == 0
    nb = B // batch_block

    # Tiny, computed once in the wrapper; VMEM-resident across the layer axis.
    inv_mask = (1.0 - padding_mask)[:, :, None]               # (B, T, 1)
    key_bias = (padding_mask * NEG_INF)[:, None, None, :]     # (B, 1, 1, T)

    # Stack per-layer weights with a leading L axis.  Big matmul weights are
    # pre-cast to matmul_dtype (halves streaming + buffering); the q scale
    # (head_dim**-0.5) is folded into Wq / bq at prep time.
    scale = hd ** -0.5

    def stack(name, dtype=jnp.float32):
        return jnp.stack([p[name] for p in layer_params]).astype(dtype)

    wqkv = jnp.stack([jnp.concatenate([p["wq"] * scale, p["wk"], p["wv"]], axis=1)
                      for p in layer_params]).astype(matmul_dtype)   # (L, D, 3D)
    bqkv = jnp.stack([jnp.concatenate([p["bq"] * scale, p["bk"], p["bv"]], axis=1)
                      for p in layer_params])                        # (L, 1, 3D) f32
    ln1w, ln1b = stack("ln1_w"), stack("ln1_b")
    wo, bo = stack("wo", matmul_dtype), stack("bo")
    ln2w, ln2b = stack("ln2_w"), stack("ln2_b")
    w1, b1 = stack("w1", matmul_dtype), stack("b1")
    w2, b2 = stack("w2", matmul_dtype), stack("b2")
    # TODO(synk): on v7x (64 MiB VMEM) at D >= 1024, additionally stream w1/w2
    # in F-chunks (extra inner grid axis with partial-sum accumulation).

    carry_in_out = (token_embeddings.dtype == jnp.float32)

    def aspec(shape):              # activations / masks: indexed by batch block
        n = len(shape)
        return pl.BlockSpec((batch_block,) + shape,
                            lambda b, l, n=n: (b,) + (0,) * n)

    def wspec(shape):              # stacked per-layer weights: indexed by layer
        n = len(shape)
        return pl.BlockSpec((1,) + shape, lambda b, l, n=n: (l,) + (0,) * n)

    in_specs = [
        aspec((T, D)),                          # token embeddings
        aspec((T, 1)),                          # (1 - padding_mask)
        aspec((1, 1, T)),                       # additive key-padding bias
        wspec((1, D)), wspec((1, D)),           # ln1 w, b
        wspec((D, 3 * D)), wspec((1, 3 * D)),   # fused Wqkv (q pre-scaled), bqkv
        wspec((D, D)), wspec((1, D)),           # Wo, bo
        wspec((1, D)), wspec((1, D)),           # ln2 w, b
        wspec((D, F)), wspec((1, F)),           # fc1
        wspec((F, D)), wspec((1, D)),           # fc2
    ]

    scratch_shapes = [] if carry_in_out else [
        pltpu.VMEM((batch_block, T, D), jnp.float32)]

    vmem_limit = _vmem_limit_bytes(
        batch_block, T, D, F, H,
        jnp.dtype(token_embeddings.dtype).itemsize,
        jnp.dtype(matmul_dtype).itemsize,
        carry_in_out, vmem_cap_bytes)

    kernel = functools.partial(fused_encoder_kernel, num_heads=H,
                               matmul_dtype=matmul_dtype,
                               carry_in_out=carry_in_out)
    x_out = pl.pallas_call(
        kernel,
        out_shape=jax.ShapeDtypeStruct((B, T, D), token_embeddings.dtype),
        grid_spec=pltpu.PrefetchScalarGridSpec(
            num_scalar_prefetch=0,
            grid=(nb, L),                       # layer axis innermost, sequential
            in_specs=in_specs,
            out_specs=aspec((T, D)),
            scratch_shapes=scratch_shapes),
        compiler_params=pltpu.CompilerParams(
            dimension_semantics=("parallel", "arbitrary"),
            vmem_limit_bytes=vmem_limit),
    )(token_embeddings, inv_mask, key_bias,
      ln1w, ln1b, wqkv, bqkv, wo, bo, ln2w, ln2b, w1, b1, w2, b2)

    return {
        "encoder_out": x_out,
        "encoder_embedding": encoder_embedding,
        "encoder_padding_mask": padding_mask,
        "encoder_states": [],
    }


def encoder_forward_ref(token_embeddings, layer_params, num_heads, padding_mask):
    """Pure-JAX reference of the same forward (for correctness checking)."""
    B, T, D = token_embeddings.shape
    H = num_heads
    hd = D // H
    pad = padding_mask.astype(jnp.float32)
    x = token_embeddings * (1.0 - pad[:, :, None])
    kb = (pad * NEG_INF)[:, None, None, :]                 # (B, 1, 1, T)

    def sh(m):                                             # (B,T,D) -> (B,H,T,hd)
        return m.reshape(B, T, H, hd).transpose(0, 2, 1, 3)

    for p in layer_params:
        res = x
        xn = _layernorm(x, p["ln1_w"], p["ln1_b"])
        q = (xn @ p["wq"] + p["bq"]) * (hd ** -0.5)
        k = xn @ p["wk"] + p["bk"]
        v = xn @ p["wv"] + p["bv"]
        q, k, v = sh(q), sh(k), sh(v)
        s = jnp.einsum('bhqd,bhkd->bhqk', q, k) + kb
        a = jax.nn.softmax(s, axis=-1)
        ctx = jnp.einsum('bhqk,bhkd->bhqd', a, v).transpose(0, 2, 1, 3).reshape(B, T, D)
        x = res + ctx @ p["wo"] + p["bo"]
        res = x
        xn = _layernorm(x, p["ln2_w"], p["ln2_b"])
        h1 = jax.nn.gelu(xn @ p["w1"] + p["b1"], approximate=False)
        x = res + h1 @ p["w2"] + p["b2"]
    return x


def init_layer_params(key, D, F):
    """Deterministic synthetic weights (nn.Linear semantics: y = x @ W + b)."""
    ks = jax.random.split(key, 6)
    s = 0.05
    return {
        "ln1_w": jnp.ones((1, D), jnp.float32),
        "ln1_b": jnp.zeros((1, D), jnp.float32),
        "wq": s * jax.random.normal(ks[0], (D, D), jnp.float32),
        "bq": jnp.zeros((1, D), jnp.float32),
        "wk": s * jax.random.normal(ks[1], (D, D), jnp.float32),
        "bk": jnp.zeros((1, D), jnp.float32),
        "wv": s * jax.random.normal(ks[2], (D, D), jnp.float32),
        "bv": jnp.zeros((1, D), jnp.float32),
        "wo": s * jax.random.normal(ks[3], (D, D), jnp.float32),
        "bo": jnp.zeros((1, D), jnp.float32),
        "ln2_w": jnp.ones((1, D), jnp.float32),
        "ln2_b": jnp.zeros((1, D), jnp.float32),
        "w1": s * jax.random.normal(ks[4], (D, F), jnp.float32),
        "b1": jnp.zeros((1, F), jnp.float32),
        "w2": s * jax.random.normal(ks[5], (F, D), jnp.float32),
        "b2": jnp.zeros((1, D), jnp.float32),
    }


if __name__ == "__main__":
    # args: encoder_embed_dim=32, encoder_ffn_embed_dim=64, encoder_attention_heads=4,
    #       encoder_layers=2, dropout=0, drop_path_rate=0, subln=False, multiway=False.
    B, T, D, F, H, L = 2, 8, 32, 64, 4, 2

    root = jax.random.PRNGKey(0)
    k_x, k_m, *k_layers = jax.random.split(root, 2 + L)

    token_embeddings = jax.random.normal(k_x, (B, T, D), jnp.float32)
    # pad the last 2 tokens of the second sequence
    padding_mask = jnp.zeros((B, T), jnp.float32).at[1, T - 2:].set(1.0)

    layer_params = [init_layer_params(k, D, F) for k in k_layers]

    ref = encoder_forward_ref(token_embeddings, layer_params, H, padding_mask)

    # Performance path: bf16 weight streaming / MXU matmuls (f32 accumulation).
    out = encoder_forward(token_embeddings, layer_params, H, padding_mask)
    jax.block_until_ready(out["encoder_out"])
    assert out["encoder_out"].shape == (B, T, D)
    assert jnp.all(jnp.isfinite(out["encoder_out"]))
    err_bf16 = float(jnp.max(jnp.abs(out["encoder_out"] - ref)))
    assert jnp.allclose(out["encoder_out"], ref, rtol=5e-2, atol=5e-2), (
        "bf16 path max abs diff = %g" % err_bf16)

    # Full-f32 path: tight parity with the pure-JAX (torch-equivalent) reference.
    out_f32 = encoder_forward(token_embeddings, layer_params, H, padding_mask,
                              matmul_dtype=jnp.float32)
    jax.block_until_ready(out_f32["encoder_out"])
    err_f32 = float(jnp.max(jnp.abs(out_f32["encoder_out"] - ref)))
    assert jnp.allclose(out_f32["encoder_out"], ref, rtol=1e-2, atol=1e-2), (
        "f32 path max abs diff = %g" % err_f32)

    print("KERNEL_OK")
</pallas_src>

<mosaic_0001>
module attributes {stable_mosaic.version = 11 : i64} {
  func.func @fused_encoder_kernel(%arg0: i32, %arg1: i32, %arg2: memref<2x8x32xf32, #tpu.memory_space<vmem>>, %arg3: memref<2x8x1xf32, #tpu.memory_space<vmem>>, %arg4: memref<2x1x1x8xf32, #tpu.memory_space<vmem>>, %arg5: memref<1x1x32xf32, #tpu.memory_space<vmem>>, %arg6: memref<1x1x32xf32, #tpu.memory_space<vmem>>, %arg7: memref<1x32x96xbf16, #tpu.memory_space<vmem>>, %arg8: memref<1x1x96xf32, #tpu.memory_space<vmem>>, %arg9: memref<1x32x32xbf16, #tpu.memory_space<vmem>>, %arg10: memref<1x1x32xf32, #tpu.memory_space<vmem>>, %arg11: memref<1x1x32xf32, #tpu.memory_space<vmem>>, %arg12: memref<1x1x32xf32, #tpu.memory_space<vmem>>, %arg13: memref<1x32x64xbf16, #tpu.memory_space<vmem>>, %arg14: memref<1x1x64xf32, #tpu.memory_space<vmem>>, %arg15: memref<1x64x32xbf16, #tpu.memory_space<vmem>>, %arg16: memref<1x1x32xf32, #tpu.memory_space<vmem>>, %arg17: memref<2x8x32xf32, #tpu.memory_space<vmem>>) attributes {dimension_semantics = [#tpu.dimension_semantics<parallel>, #tpu.dimension_semantics<arbitrary>], iteration_bounds = array<i64: 1, 2>, scalar_prefetch = 0 : i64, scratch_operands = 0 : i64, tpu.core_type = #tpu.core_type<tc>, window_params = [{transform_indices = @transform_0, window_bounds = array<i64: 2, 8, 32>}, {transform_indices = @transform_1, window_bounds = array<i64: 2, 8, 1>}, {transform_indices = @transform_2, window_bounds = array<i64: 2, 1, 1, 8>}, {transform_indices = @transform_3, window_bounds = array<i64: 1, 1, 32>}, {transform_indices = @transform_4, window_bounds = array<i64: 1, 1, 32>}, {transform_indices = @transform_5, window_bounds = array<i64: 1, 32, 96>}, {transform_indices = @transform_6, window_bounds = array<i64: 1, 1, 96>}, {transform_indices = @transform_7, window_bounds = array<i64: 1, 32, 32>}, {transform_indices = @transform_8, window_bounds = array<i64: 1, 1, 32>}, {transform_indices = @transform_9, window_bounds = array<i64: 1, 1, 32>}, {transform_indices = @transform_10, window_bounds = array<i64: 1, 1, 32>}, {transform_indices = @transform_11, window_bounds = array<i64: 1, 32, 64>}, {transform_indices = @transform_12, window_bounds = array<i64: 1, 1, 64>}, {transform_indices = @transform_13, window_bounds = array<i64: 1, 64, 32>}, {transform_indices = @transform_14, window_bounds = array<i64: 1, 1, 32>}, {transform_indices = @transform_15, window_bounds = array<i64: 2, 8, 32>}]} {
    %c0_i32 = arith.constant 0 : i32
    %0 = arith.cmpi eq, %arg1, %c0_i32 : i32
    %1 = arith.extui %0 : i1 to i32
    %c0_i32_0 = arith.constant 0 : i32
    %2 = arith.cmpi ne, %1, %c0_i32_0 : i32
    scf.if %2 {
      %c0_78 = arith.constant 0 : index
      %c0_79 = arith.constant 0 : index
      %c0_80 = arith.constant 0 : index
      %219 = vector.load %arg2[%c0_78, %c0_79, %c0_80] : memref<2x8x32xf32, #tpu.memory_space<vmem>>, vector<2x8x32xf32>
      %c0_81 = arith.constant 0 : index
      %c0_82 = arith.constant 0 : index
      %c0_83 = arith.constant 0 : index
      %220 = vector.load %arg3[%c0_81, %c0_82, %c0_83] : memref<2x8x1xf32, #tpu.memory_space<vmem>>, vector<2x8x1xf32>
      %221 = vector.broadcast %220 : vector<2x8x1xf32> to vector<2x8x32xf32>
      %222 = arith.mulf %219, %221 : vector<2x8x32xf32>
      %c0_84 = arith.constant 0 : index
      %c0_85 = arith.constant 0 : index
      %c0_86 = arith.constant 0 : index
      %223 = vector.load %arg17[%c0_84, %c0_85, %c0_86] : memref<2x8x32xf32, #tpu.memory_space<vmem>>, vector<2x8x32xf32>
      tpu.vector_store %arg17[%c0_84, %c0_85, %c0_86], %222 {strides = array<i32>} : memref<2x8x32xf32, #tpu.memory_space<vmem>>, vector<2x8x32xf32>,
    } else {
    }
    %c0 = arith.constant 0 : index
    %c0_1 = arith.constant 0 : index
    %c0_2 = arith.constant 0 : index
    %3 = vector.load %arg17[%c0, %c0_1, %c0_2] : memref<2x8x32xf32, #tpu.memory_space<vmem>>, vector<2x8x32xf32>
    %4 = vector.shape_cast %3 : vector<2x8x32xf32> to vector<16x32xf32>
    %c0_3 = arith.constant 0 : index
    %c0_4 = arith.constant 0 : index
    %c0_5 = arith.constant 0 : index
    %5 = vector.load %arg5[%c0_3, %c0_4, %c0_5] : memref<1x1x32xf32, #tpu.memory_space<vmem>>, vector<1x1x32xf32>
    %6 = vector.shape_cast %5 : vector<1x1x32xf32> to vector<1x32xf32>
    %c0_6 = arith.constant 0 : index
    %c0_7 = arith.constant 0 : index
    %c0_8 = arith.constant 0 : index
    %7 = vector.load %arg6[%c0_6, %c0_7, %c0_8] : memref<1x1x32xf32, #tpu.memory_space<vmem>>, vector<1x1x32xf32>
    %8 = vector.shape_cast %7 : vector<1x1x32xf32> to vector<1x32xf32>
    %cst = arith.constant dense<0.000000e+00> : vector<16xf32>
    %9 = vector.multi_reduction <add>, %4, %cst [1] : vector<16x32xf32> to vector<16xf32>
    %10 = vector.shape_cast %9 : vector<16xf32> to vector<16x1xf32>
    %cst_9 = arith.constant 3.200000e+01 : f32
    %11 = vector.broadcast %cst_9 : f32 to vector<16x1xf32>
    %12 = arith.divf %10, %11 : vector<16x1xf32>
    %13 = vector.broadcast %12 : vector<16x1xf32> to vector<16x32xf32>
    %14 = arith.subf %4, %13 : vector<16x32xf32>
    %15 = arith.mulf %14, %14 : vector<16x32xf32>
    %cst_10 = arith.constant dense<0.000000e+00> : vector<16xf32>
    %16 = vector.multi_reduction <add>, %15, %cst_10 [1] : vector<16x32xf32> to vector<16xf32>
    %17 = vector.shape_cast %16 : vector<16xf32> to vector<16x1xf32>
    %cst_11 = arith.constant 3.200000e+01 : f32
    %18 = vector.broadcast %cst_11 : f32 to vector<16x1xf32>
    %19 = arith.divf %17, %18 : vector<16x1xf32>
    %20 = vector.broadcast %12 : vector<16x1xf32> to vector<16x32xf32>
    %21 = arith.subf %4, %20 : vector<16x32xf32>
    %cst_12 = arith.constant 9.99999974E-6 : f32
    %22 = vector.broadcast %cst_12 : f32 to vector<16x1xf32>
    %23 = arith.addf %19, %22 : vector<16x1xf32>
    %24 = math.rsqrt %23 : vector<16x1xf32>
    %25 = vector.broadcast %24 : vector<16x1xf32> to vector<16x32xf32>
    %26 = arith.mulf %21, %25 : vector<16x32xf32>
    %27 = vector.broadcast %6 : vector<1x32xf32> to vector<16x32xf32>
    %28 = arith.mulf %26, %27 : vector<16x32xf32>
    %29 = vector.broadcast %8 : vector<1x32xf32> to vector<16x32xf32>
    %30 = arith.addf %28, %29 : vector<16x32xf32>
    %31 = arith.truncf %30 : vector<16x32xf32> to vector<16x32xbf16>
    %c0_13 = arith.constant 0 : index
    %c0_14 = arith.constant 0 : index
    %c0_15 = arith.constant 0 : index
    %32 = vector.load %arg7[%c0_13, %c0_14, %c0_15] : memref<1x32x96xbf16, #tpu.memory_space<vmem>>, vector<1x32x96xbf16>
    %33 = vector.shape_cast %32 : vector<1x32x96xbf16> to vector<32x96xbf16>
    %cst_16 = arith.constant dense<0.000000e+00> : vector<16x96xf32>
    %34 = tpu.matmul %31, %33, %cst_16 {dimension_numbers = #tpu.dot_dimension_numbers<[1], [0], [0], [1], [0, 0, 1, 1], [], []>} : vector<16x32xbf16>, vector<32x96xbf16>, vector<16x96xf32> -> vector<16x96xf32>
    %c0_17 = arith.constant 0 : index
    %c0_18 = arith.constant 0 : index
    %c0_19 = arith.constant 0 : index
    %35 = vector.load %arg8[%c0_17, %c0_18, %c0_19] : memref<1x1x96xf32, #tpu.memory_space<vmem>>, vector<1x1x96xf32>
    %36 = vector.shape_cast %35 : vector<1x1x96xf32> to vector<1x96xf32>
    %37 = vector.broadcast %36 : vector<1x96xf32> to vector<16x96xf32>
    %38 = arith.addf %34, %37 : vector<16x96xf32>
    %39 = vector.extract_strided_slice %38 {offsets = [0, 0], sizes = [16, 8], strides = [1, 1]} : vector<16x96xf32> to vector<16x8xf32>
    %40 = arith.truncf %39 : vector<16x8xf32> to vector<16x8xbf16>
    %41 = vector.shape_cast %40 : vector<16x8xbf16> to vector<2x8x8xbf16>
    %42 = vector.extract_strided_slice %38 {offsets = [0, 8], sizes = [16, 8], strides = [1, 1]} : vector<16x96xf32> to vector<16x8xf32>
    %43 = arith.truncf %42 : vector<16x8xf32> to vector<16x8xbf16>
    %44 = vector.shape_cast %43 : vector<16x8xbf16> to vector<2x8x8xbf16>
    %45 = vector.extract_strided_slice %38 {offsets = [0, 16], sizes = [16, 8], strides = [1, 1]} : vector<16x96xf32> to vector<16x8xf32>
    %46 = arith.truncf %45 : vector<16x8xf32> to vector<16x8xbf16>
    %47 = vector.shape_cast %46 : vector<16x8xbf16> to vector<2x8x8xbf16>
    %48 = vector.extract_strided_slice %38 {offsets = [0, 24], sizes = [16, 8], strides = [1, 1]} : vector<16x96xf32> to vector<16x8xf32>
    %49 = arith.truncf %48 : vector<16x8xf32> to vector<16x8xbf16>
    %50 = vector.shape_cast %49 : vector<16x8xbf16> to vector<2x8x8xbf16>
    %51 = vector.shape_cast %41 : vector<2x8x8xbf16> to vector<2x1x8x8xbf16>
    %52 = vector.shape_cast %44 : vector<2x8x8xbf16> to vector<2x1x8x8xbf16>
    %53 = vector.shape_cast %47 : vector<2x8x8xbf16> to vector<2x1x8x8xbf16>
    %54 = vector.shape_cast %50 : vector<2x8x8xbf16> to vector<2x1x8x8xbf16>
    %55 = tpu.concatenate %51, %52, %53, %54 in 1 : vector<2x1x8x8xbf16>, vector<2x1x8x8xbf16>, vector<2x1x8x8xbf16>, vector<2x1x8x8xbf16> -> vector<2x4x8x8xbf16>
    %56 = vector.shape_cast %55 : vector<2x4x8x8xbf16> to vector<8x8x8xbf16>
    %57 = vector.extract_strided_slice %38 {offsets = [0, 32], sizes = [16, 8], strides = [1, 1]} : vector<16x96xf32> to vector<16x8xf32>
    %58 = arith.truncf %57 : vector<16x8xf32> to vector<16x8xbf16>
    %59 = vector.shape_cast %58 : vector<16x8xbf16> to vector<2x8x8xbf16>
    %60 = vector.extract_strided_slice %38 {offsets = [0, 40], sizes = [16, 8], strides = [1, 1]} : vector<16x96xf32> to vector<16x8xf32>
    %61 = arith.truncf %60 : vector<16x8xf32> to vector<16x8xbf16>
    %62 = vector.shape_cast %61 : vector<16x8xbf16> to vector<2x8x8xbf16>
    %63 = vector.extract_strided_slice %38 {offsets = [0, 48], sizes = [16, 8], strides = [1, 1]} : vector<16x96xf32> to vector<16x8xf32>
    %64 = arith.truncf %63 : vector<16x8xf32> to vector<16x8xbf16>
    %65 = vector.shape_cast %64 : vector<16x8xbf16> to vector<2x8x8xbf16>
    %66 = vector.extract_strided_slice %38 {offsets = [0, 56], sizes = [16, 8], strides = [1, 1]} : vector<16x96xf32> to vector<16x8xf32>
    %67 = arith.truncf %66 : vector<16x8xf32> to vector<16x8xbf16>
    %68 = vector.shape_cast %67 : vector<16x8xbf16> to vector<2x8x8xbf16>
    %69 = vector.shape_cast %59 : vector<2x8x8xbf16> to vector<2x1x8x8xbf16>
    %70 = vector.shape_cast %62 : vector<2x8x8xbf16> to vector<2x1x8x8xbf16>
    %71 = vector.shape_cast %65 : vector<2x8x8xbf16> to vector<2x1x8x8xbf16>
    %72 = vector.shape_cast %68 : vector<2x8x8xbf16> to vector<2x1x8x8xbf16>
    %73 = tpu.concatenate %69, %70, %71, %72 in 1 : vector<2x1x8x8xbf16>, vector<2x1x8x8xbf16>, vector<2x1x8x8xbf16>, vector<2x1x8x8xbf16> -> vector<2x4x8x8xbf16>
    %74 = vector.shape_cast %73 : vector<2x4x8x8xbf16> to vector<8x8x8xbf16>
    %75 = vector.extract_strided_slice %38 {offsets = [0, 64], sizes = [16, 8], strides = [1, 1]} : vector<16x96xf32> to vector<16x8xf32>
    %76 = arith.truncf %75 : vector<16x8xf32> to vector<16x8xbf16>
    %77 = vector.shape_cast %76 : vector<16x8xbf16> to vector<2x8x8xbf16>
    %78 = vector.extract_strided_slice %38 {offsets = [0, 72], sizes = [16, 8], strides = [1, 1]} : vector<16x96xf32> to vector<16x8xf32>
    %79 = arith.truncf %78 : vector<16x8xf32> to vector<16x8xbf16>
    %80 = vector.shape_cast %79 : vector<16x8xbf16> to vector<2x8x8xbf16>
    %81 = vector.extract_strided_slice %38 {offsets = [0, 80], sizes = [16, 8], strides = [1, 1]} : vector<16x96xf32> to vector<16x8xf32>
    %82 = arith.truncf %81 : vector<16x8xf32> to vector<16x8xbf16>
    %83 = vector.shape_cast %82 : vector<16x8xbf16> to vector<2x8x8xbf16>
    %84 = vector.extract_strided_slice %38 {offsets = [0, 88], sizes = [16, 8], strides = [1, 1]} : vector<16x96xf32> to vector<16x8xf32>
    %85 = arith.truncf %84 : vector<16x8xf32> to vector<16x8xbf16>
    %86 = vector.shape_cast %85 : vector<16x8xbf16> to vector<2x8x8xbf16>
    %87 = vector.shape_cast %77 : vector<2x8x8xbf16> to vector<2x1x8x8xbf16>
    %88 = vector.shape_cast %80 : vector<2x8x8xbf16> to vector<2x1x8x8xbf16>
    %89 = vector.shape_cast %83 : vector<2x8x8xbf16> to vector<2x1x8x8xbf16>
    %90 = vector.shape_cast %86 : vector<2x8x8xbf16> to vector<2x1x8x8xbf16>
    %91 = tpu.concatenate %87, %88, %89, %90 in 1 : vector<2x1x8x8xbf16>, vector<2x1x8x8xbf16>, vector<2x1x8x8xbf16>, vector<2x1x8x8xbf16> -> vector<2x4x8x8xbf16>
    %92 = vector.shape_cast %91 : vector<2x4x8x8xbf16> to vector<8x8x8xbf16>
    "tpu.trace_start"() <{level = 10 : i32, message = "bqd,bkd->bqk"}> : () -> ()
    %cst_20 = arith.constant dense<0.000000e+00> : vector<8x8x8xf32>
    %93 = tpu.matmul %56, %74, %cst_20 {dimension_numbers = #tpu.dot_dimension_numbers<[2], [2], [1], [1], [0, 0, 0, 1, 1, 1], [0], [0]>} : vector<8x8x8xbf16>, vector<8x8x8xbf16>, vector<8x8x8xf32> -> vector<8x8x8xf32>
    "tpu.trace_stop"() : () -> ()
    %94 = vector.shape_cast %93 : vector<8x8x8xf32> to vector<2x4x8x8xf32>
    %c0_21 = arith.constant 0 : index
    %c0_22 = arith.constant 0 : index
    %c0_23 = arith.constant 0 : index
    %c0_24 = arith.constant 0 : index
    %95 = vector.load %arg4[%c0_21, %c0_22, %c0_23, %c0_24] : memref<2x1x1x8xf32, #tpu.memory_space<vmem>>, vector<2x1x1x8xf32>
    %96 = vector.broadcast %95 : vector<2x1x1x8xf32> to vector<2x4x8x8xf32>
    %97 = arith.addf %94, %96 : vector<2x4x8x8xf32>
    %cst_25 = arith.constant dense<0xFF800000> : vector<2x4x8xf32>
    %98 = vector.multi_reduction <maximumf>, %97, %cst_25 [3] : vector<2x4x8x8xf32> to vector<2x4x8xf32>
    %99 = vector.shape_cast %98 : vector<2x4x8xf32> to vector<2x4x8x1xf32>
    %100 = vector.broadcast %99 : vector<2x4x8x1xf32> to vector<2x4x8x8xf32>
    %101 = arith.subf %97, %100 : vector<2x4x8x8xf32>
    %102 = math.exp %101 : vector<2x4x8x8xf32>
    %cst_26 = arith.constant dense<0.000000e+00> : vector<2x4x8xf32>
    %103 = vector.multi_reduction <add>, %102, %cst_26 [3] : vector<2x4x8x8xf32> to vector<2x4x8xf32>
    %104 = vector.shape_cast %103 : vector<2x4x8xf32> to vector<2x4x8x1xf32>
    %105 = tpu.reciprocal %104 {approx = true} : vector<2x4x8x1xf32> -> vector<2x4x8x1xf32>
    %106 = vector.broadcast %105 : vector<2x4x8x1xf32> to vector<2x4x8x8xf32>
    %107 = arith.mulf %102, %106 : vector<2x4x8x8xf32>
    %108 = arith.truncf %107 : vector<2x4x8x8xf32> to vector<2x4x8x8xbf16>
    %109 = vector.shape_cast %108 : vector<2x4x8x8xbf16> to vector<8x8x8xbf16>
    "tpu.trace_start"() <{level = 10 : i32, message = "bqk,bkd->bqd"}> : () -> ()
    %cst_27 = arith.constant dense<0.000000e+00> : vector<8x8x8xf32>
    %110 = tpu.matmul %109, %92, %cst_27 {dimension_numbers = #tpu.dot_dimension_numbers<[2], [1], [1], [2], [0, 0, 0, 1, 1, 2], [0], [0]>} : vector<8x8x8xbf16>, vector<8x8x8xbf16>, vector<8x8x8xf32> -> vector<8x8x8xf32>
    "tpu.trace_stop"() : () -> ()
    %111 = arith.truncf %110 : vector<8x8x8xf32> to vector<8x8x8xbf16>
    %112 = vector.shape_cast %111 : vector<8x8x8xbf16> to vector<2x4x8x8xbf16>
    %113 = vector.extract_strided_slice %112 {offsets = [0, 0, 0, 0], sizes = [2, 1, 8, 8], strides = [1, 1, 1, 1]} : vector<2x4x8x8xbf16> to vector<2x1x8x8xbf16>
    %114 = vector.shape_cast %113 : vector<2x1x8x8xbf16> to vector<2x8x8xbf16>
    %115 = vector.shape_cast %114 : vector<2x8x8xbf16> to vector<16x8xbf16>
    %116 = vector.extract_strided_slice %112 {offsets = [0, 1, 0, 0], sizes = [2, 1, 8, 8], strides = [1, 1, 1, 1]} : vector<2x4x8x8xbf16> to vector<2x1x8x8xbf16>
    %117 = vector.shape_cast %116 : vector<2x1x8x8xbf16> to vector<2x8x8xbf16>
    %118 = vector.shape_cast %117 : vector<2x8x8xbf16> to vector<16x8xbf16>
    %119 = vector.extract_strided_slice %112 {offsets = [0, 2, 0, 0], sizes = [2, 1, 8, 8], strides = [1, 1, 1, 1]} : vector<2x4x8x8xbf16> to vector<2x1x8x8xbf16>
    %120 = vector.shape_cast %119 : vector<2x1x8x8xbf16> to vector<2x8x8xbf16>
    %121 = vector.shape_cast %120 : vector<2x8x8xbf16> to vector<16x8xbf16>
    %122 = vector.extract_strided_slice %112 {offsets = [0, 3, 0, 0], sizes = [2, 1, 8, 8], strides = [1, 1, 1, 1]} : vector<2x4x8x8xbf16> to vector<2x1x8x8xbf16>
    %123 = vector.shape_cast %122 : vector<2x1x8x8xbf16> to vector<2x8x8xbf16>
    %124 = vector.shape_cast %123 : vector<2x8x8xbf16> to vector<16x8xbf16>
    %125 = tpu.concatenate %115, %118, %121, %124 in 1 : vector<16x8xbf16>, vector<16x8xbf16>, vector<16x8xbf16>, vector<16x8xbf16> -> vector<16x32xbf16>
    %c0_28 = arith.constant 0 : index
    %c0_29 = arith.constant 0 : index
    %c0_30 = arith.constant 0 : index
    %126 = vector.load %arg9[%c0_28, %c0_29, %c0_30] : memref<1x32x32xbf16, #tpu.memory_space<vmem>>, vector<1x32x32xbf16>
    %127 = vector.shape_cast %126 : vector<1x32x32xbf16> to vector<32x32xbf16>
    %cst_31 = arith.constant dense<0.000000e+00> : vector<16x32xf32>
    %128 = tpu.matmul %125, %127, %cst_31 {dimension_numbers = #tpu.dot_dimension_numbers<[1], [0], [0], [1], [0, 0, 1, 1], [], []>} : vector<16x32xbf16>, vector<32x32xbf16>, vector<16x32xf32> -> vector<16x32xf32>
    %c0_32 = arith.constant 0 : index
    %c0_33 = arith.constant 0 : index
    %c0_34 = arith.constant 0 : index
    %129 = vector.load %arg10[%c0_32, %c0_33, %c0_34] : memref<1x1x32xf32, #tpu.memory_space<vmem>>, vector<1x1x32xf32>
    %130 = vector.shape_cast %129 : vector<1x1x32xf32> to vector<1x32xf32>
    %131 = vector.broadcast %130 : vector<1x32xf32> to vector<16x32xf32>
    %132 = arith.addf %128, %131 : vector<16x32xf32>
    %133 = arith.addf %4, %132 : vector<16x32xf32>
    %c0_35 = arith.constant 0 : index
    %c0_36 = arith.constant 0 : index
    %c0_37 = arith.constant 0 : index
    %134 = vector.load %arg11[%c0_35, %c0_36, %c0_37] : memref<1x1x32xf32, #tpu.memory_space<vmem>>, vector<1x1x32xf32>
    %135 = vector.shape_cast %134 : vector<1x1x32xf32> to vector<1x32xf32>
    %c0_38 = arith.constant 0 : index
    %c0_39 = arith.constant 0 : index
    %c0_40 = arith.constant 0 : index
    %136 = vector.load %arg12[%c0_38, %c0_39, %c0_40] : memref<1x1x32xf32, #tpu.memory_space<vmem>>, vector<1x1x32xf32>
    %137 = vector.shape_cast %136 : vector<1x1x32xf32> to vector<1x32xf32>
    %cst_41 = arith.constant dense<0.000000e+00> : vector<16xf32>
    %138 = vector.multi_reduction <add>, %133, %cst_41 [1] : vector<16x32xf32> to vector<16xf32>
    %139 = vector.shape_cast %138 : vector<16xf32> to vector<16x1xf32>
    %cst_42 = arith.constant 3.200000e+01 : f32
    %140 = vector.broadcast %cst_42 : f32 to vector<16x1xf32>
    %141 = arith.divf %139, %140 : vector<16x1xf32>
    %142 = vector.broadcast %141 : vector<16x1xf32> to vector<16x32xf32>
    %143 = arith.subf %133, %142 : vector<16x32xf32>
    %144 = arith.mulf %143, %143 : vector<16x32xf32>
    %cst_43 = arith.constant dense<0.000000e+00> : vector<16xf32>
    %145 = vector.multi_reduction <add>, %144, %cst_43 [1] : vector<16x32xf32> to vector<16xf32>
    %146 = vector.shape_cast %145 : vector<16xf32> to vector<16x1xf32>
    %cst_44 = arith.constant 3.200000e+01 : f32
    %147 = vector.broadcast %cst_44 : f32 to vector<16x1xf32>
    %148 = arith.divf %146, %147 : vector<16x1xf32>
    %149 = vector.broadcast %141 : vector<16x1xf32> to vector<16x32xf32>
    %150 = arith.subf %133, %149 : vector<16x32xf32>
    %cst_45 = arith.constant 9.99999974E-6 : f32
    %151 = vector.broadcast %cst_45 : f32 to vector<16x1xf32>
    %152 = arith.addf %148, %151 : vector<16x1xf32>
    %153 = math.rsqrt %152 : vector<16x1xf32>
    %154 = vector.broadcast %153 : vector<16x1xf32> to vector<16x32xf32>
    %155 = arith.mulf %150, %154 : vector<16x32xf32>
    %156 = vector.broadcast %135 : vector<1x32xf32> to vector<16x32xf32>
    %157 = arith.mulf %155, %156 : vector<16x32xf32>
    %158 = vector.broadcast %137 : vector<1x32xf32> to vector<16x32xf32>
    %159 = arith.addf %157, %158 : vector<16x32xf32>
    %160 = arith.truncf %159 : vector<16x32xf32> to vector<16x32xbf16>
    %c0_46 = arith.constant 0 : index
    %c0_47 = arith.constant 0 : index
    %c0_48 = arith.constant 0 : index
    %161 = vector.load %arg13[%c0_46, %c0_47, %c0_48] : memref<1x32x64xbf16, #tpu.memory_space<vmem>>, vector<1x32x64xbf16>
    %162 = vector.shape_cast %161 : vector<1x32x64xbf16> to vector<32x64xbf16>
    %cst_49 = arith.constant dense<0.000000e+00> : vector<16x64xf32>
    %163 = tpu.matmul %160, %162, %cst_49 {dimension_numbers = #tpu.dot_dimension_numbers<[1], [0], [0], [1], [0, 0, 1, 1], [], []>} : vector<16x32xbf16>, vector<32x64xbf16>, vector<16x64xf32> -> vector<16x64xf32>
    %c0_50 = arith.constant 0 : index
    %c0_51 = arith.constant 0 : index
    %c0_52 = arith.constant 0 : index
    %164 = vector.load %arg14[%c0_50, %c0_51, %c0_52] : memref<1x1x64xf32, #tpu.memory_space<vmem>>, vector<1x1x64xf32>
    %165 = vector.shape_cast %164 : vector<1x1x64xf32> to vector<1x64xf32>
    %166 = vector.broadcast %165 : vector<1x64xf32> to vector<16x64xf32>
    %167 = arith.addf %163, %166 : vector<16x64xf32>
    %168 = math.absf %167 : vector<16x64xf32>
    %cst_53 = arith.constant 0.707106769 : f32
    %169 = vector.broadcast %cst_53 : f32 to vector<16x64xf32>
    %170 = arith.mulf %168, %169 : vector<16x64xf32>
    %cst_54 = arith.constant 0.327591091 : f32
    %171 = vector.broadcast %cst_54 : f32 to vector<16x64xf32>
    %172 = arith.mulf %171, %170 : vector<16x64xf32>
    %cst_55 = arith.constant 1.000000e+00 : f32
    %173 = vector.broadcast %cst_55 : f32 to vector<16x64xf32>
    %174 = arith.addf %173, %172 : vector<16x64xf32>
    %cst_56 = arith.constant 1.000000e+00 : f32
    %175 = vector.broadcast %cst_56 : f32 to vector<16x64xf32>
    %176 = arith.divf %175, %174 : vector<16x64xf32>
    %cst_57 = arith.constant 1.06140542 : f32
    %177 = vector.broadcast %cst_57 : f32 to vector<16x64xf32>
    %178 = arith.mulf %177, %176 : vector<16x64xf32>
    %cst_58 = arith.constant 1.45315206 : f32
    %179 = vector.broadcast %cst_58 : f32 to vector<16x64xf32>
    %180 = arith.subf %178, %179 : vector<16x64xf32>
    %181 = arith.mulf %180, %176 : vector<16x64xf32>
    %cst_59 = arith.constant 1.42141378 : f32
    %182 = vector.broadcast %cst_59 : f32 to vector<16x64xf32>
    %183 = arith.addf %181, %182 : vector<16x64xf32>
    %184 = arith.mulf %183, %176 : vector<16x64xf32>
    %cst_60 = arith.constant 0.284496725 : f32
    %185 = vector.broadcast %cst_60 : f32 to vector<16x64xf32>
    %186 = arith.subf %184, %185 : vector<16x64xf32>
    %187 = arith.mulf %186, %176 : vector<16x64xf32>
    %cst_61 = arith.constant 0.254829586 : f32
    %188 = vector.broadcast %cst_61 : f32 to vector<16x64xf32>
    %189 = arith.addf %187, %188 : vector<16x64xf32>
    %190 = arith.mulf %189, %176 : vector<16x64xf32>
    %cst_62 = arith.constant 0.000000e+00 : f32
    %191 = vector.broadcast %cst_62 : f32 to vector<16x64xf32>
    %192 = arith.subf %191, %170 : vector<16x64xf32>
    %193 = arith.mulf %192, %170 : vector<16x64xf32>
    %194 = math.exp %193 : vector<16x64xf32>
    %195 = arith.mulf %190, %194 : vector<16x64xf32>
    %cst_63 = arith.constant 1.000000e+00 : f32
    %196 = vector.broadcast %cst_63 : f32 to vector<16x64xf32>
    %197 = arith.subf %196, %195 : vector<16x64xf32>
    %cst_64 = arith.constant 0.000000e+00 : f32
    %198 = vector.broadcast %cst_64 : f32 to vector<16x64xf32>
    %199 = arith.cmpf oge, %167, %198 : vector<16x64xf32>
    %cst_65 = arith.constant 0.000000e+00 : f32
    %200 = vector.broadcast %cst_65 : f32 to vector<16x64xf32>
    %201 = arith.subf %200, %197 : vector<16x64xf32>
    %202 = arith.select %199, %197, %201 : vector<16x64xi1>, vector<16x64xf32>
    %cst_66 = arith.constant 5.000000e-01 : f32
    %203 = vector.broadcast %cst_66 : f32 to vector<16x64xf32>
    %204 = arith.mulf %167, %203 : vector<16x64xf32>
    %cst_67 = arith.constant 1.000000e+00 : f32
    %205 = vector.broadcast %cst_67 : f32 to vector<16x64xf32>
    %206 = arith.addf %205, %202 : vector<16x64xf32>
    %207 = arith.mulf %204, %206 : vector<16x64xf32>
    %208 = arith.truncf %207 : vector<16x64xf32> to vector<16x64xbf16>
    %c0_68 = arith.constant 0 : index
    %c0_69 = arith.constant 0 : index
    %c0_70 = arith.constant 0 : index
    %209 = vector.load %arg15[%c0_68, %c0_69, %c0_70] : memref<1x64x32xbf16, #tpu.memory_space<vmem>>, vector<1x64x32xbf16>
    %210 = vector.shape_cast %209 : vector<1x64x32xbf16> to vector<64x32xbf16>
    %cst_71 = arith.constant dense<0.000000e+00> : vector<16x32xf32>
    %211 = tpu.matmul %208, %210, %cst_71 {dimension_numbers = #tpu.dot_dimension_numbers<[1], [0], [0], [1], [0, 0, 1, 1], [], []>} : vector<16x64xbf16>, vector<64x32xbf16>, vector<16x32xf32> -> vector<16x32xf32>
    %c0_72 = arith.constant 0 : index
    %c0_73 = arith.constant 0 : index
    %c0_74 = arith.constant 0 : index
    %212 = vector.load %arg16[%c0_72, %c0_73, %c0_74] : memref<1x1x32xf32, #tpu.memory_space<vmem>>, vector<1x1x32xf32>
    %213 = vector.shape_cast %212 : vector<1x1x32xf32> to vector<1x32xf32>
    %214 = vector.broadcast %213 : vector<1x32xf32> to vector<16x32xf32>
    %215 = arith.addf %211, %214 : vector<16x32xf32>
    %216 = arith.addf %133, %215 : vector<16x32xf32>
    %217 = vector.shape_cast %216 : vector<16x32xf32> to vector<2x8x32xf32>
    %c0_75 = arith.constant 0 : index
    %c0_76 = arith.constant 0 : index
    %c0_77 = arith.constant 0 : index
    %218 = vector.load %arg17[%c0_75, %c0_76, %c0_77] : memref<2x8x32xf32, #tpu.memory_space<vmem>>, vector<2x8x32xf32>
    tpu.vector_store %arg17[%c0_75, %c0_76, %c0_77], %217 {strides = array<i32>} : memref<2x8x32xf32, #tpu.memory_space<vmem>>, vector<2x8x32xf32>,
    return
  }
  func.func @transform_0(%arg0: i32, %arg1: i32) -> (i32, i32, i32) {
    %c0_i32 = arith.constant 0 : i32
    %c0_i32_0 = arith.constant 0 : i32
    %c0_i32_1 = arith.constant 0 : i32
    return %arg0, %c0_i32, %c0_i32_0 : i32, i32, i32
  }
  func.func @transform_1(%arg0: i32, %arg1: i32) -> (i32, i32, i32) {
    %c0_i32 = arith.constant 0 : i32
    %c0_i32_0 = arith.constant 0 : i32
    %c0_i32_1 = arith.constant 0 : i32
    return %arg0, %c0_i32, %c0_i32_0 : i32, i32, i32
  }
  func.func @transform_2(%arg0: i32, %arg1: i32) -> (i32, i32, i32, i32) {
    %c0_i32 = arith.constant 0 : i32
    %c0_i32_0 = arith.constant 0 : i32
    %c0_i32_1 = arith.constant 0 : i32
    %c0_i32_2 = arith.constant 0 : i32
    return %arg0, %c0_i32, %c0_i32_0, %c0_i32_1 : i32, i32, i32, i32
  }
  func.func @transform_3(%arg0: i32, %arg1: i32) -> (i32, i32, i32) {
    %c0_i32 = arith.constant 0 : i32
    %c0_i32_0 = arith.constant 0 : i32
    %c0_i32_1 = arith.constant 0 : i32
    return %arg1, %c0_i32, %c0_i32_0 : i32, i32, i32
  }
  func.func @transform_4(%arg0: i32, %arg1: i32) -> (i32, i32, i32) {
    %c0_i32 = arith.constant 0 : i32
    %c0_i32_0 = arith.constant 0 : i32
    %c0_i32_1 = arith.constant 0 : i32
    return %arg1, %c0_i32, %c0_i32_0 : i32, i32, i32
  }
  func.func @transform_5(%arg0: i32, %arg1: i32) -> (i32, i32, i32) {
    %c0_i32 = arith.constant 0 : i32
    %c0_i32_0 = arith.constant 0 : i32
    %c0_i32_1 = arith.constant 0 : i32
    return %arg1, %c0_i32, %c0_i32_0 : i32, i32, i32
  }
  func.func @transform_6(%arg0: i32, %arg1: i32) -> (i32, i32, i32) {
    %c0_i32 = arith.constant 0 : i32
    %c0_i32_0 = arith.constant 0 : i32
    %c0_i32_1 = arith.constant 0 : i32
    return %arg1, %c0_i32, %c0_i32_0 : i32, i32, i32
  }
  func.func @transform_7(%arg0: i32, %arg1: i32) -> (i32, i32, i32) {
    %c0_i32 = arith.constant 0 : i32
    %c0_i32_0 = arith.constant 0 : i32
    %c0_i32_1 = arith.constant 0 : i32
    return %arg1, %c0_i32, %c0_i32_0 : i32, i32, i32
  }
  func.func @transform_8(%arg0: i32, %arg1: i32) -> (i32, i32, i32) {
    %c0_i32 = arith.constant 0 : i32
    %c0_i32_0 = arith.constant 0 : i32
    %c0_i32_1 = arith.constant 0 : i32
    return %arg1, %c0_i32, %c0_i32_0 : i32, i32, i32
  }
  func.func @transform_9(%arg0: i32, %arg1: i32) -> (i32, i32, i32) {
    %c0_i32 = arith.constant 0 : i32
    %c0_i32_0 = arith.constant 0 : i32
    %c0_i32_1 = arith.constant 0 : i32
    return %arg1, %c0_i32, %c0_i32_0 : i32, i32, i32
  }
  func.func @transform_10(%arg0: i32, %arg1: i32) -> (i32, i32, i32) {
    %c0_i32 = arith.constant 0 : i32
    %c0_i32_0 = arith.constant 0 : i32
    %c0_i32_1 = arith.constant 0 : i32
    return %arg1, %c0_i32, %c0_i32_0 : i32, i32, i32
  }
  func.func @transform_11(%arg0: i32, %arg1: i32) -> (i32, i32, i32) {
    %c0_i32 = arith.constant 0 : i32
    %c0_i32_0 = arith.constant 0 : i32
    %c0_i32_1 = arith.constant 0 : i32
    return %arg1, %c0_i32, %c0_i32_0 : i32, i32, i32
  }
  func.func @transform_12(%arg0: i32, %arg1: i32) -> (i32, i32, i32) {
    %c0_i32 = arith.constant 0 : i32
    %c0_i32_0 = arith.constant 0 : i32
    %c0_i32_1 = arith.constant 0 : i32
    return %arg1, %c0_i32, %c0_i32_0 : i32, i32, i32
  }
  func.func @transform_13(%arg0: i32, %arg1: i32) -> (i32, i32, i32) {
    %c0_i32 = arith.constant 0 : i32
    %c0_i32_0 = arith.constant 0 : i32
    %c0_i32_1 = arith.constant 0 : i32
    return %arg1, %c0_i32, %c0_i32_0 : i32, i32, i32
  }
  func.func @transform_14(%arg0: i32, %arg1: i32) -> (i32, i32, i32) {
    %c0_i32 = arith.constant 0 : i32
    %c0_i32_0 = arith.constant 0 : i32
    %c0_i32_1 = arith.constant 0 : i32
    return %arg1, %c0_i32, %c0_i32_0 : i32, i32, i32
  }
  func.func @transform_15(%arg0: i32, %arg1: i32) -> (i32, i32, i32) {
    %c0_i32 = arith.constant 0 : i32
    %c0_i32_0 = arith.constant 0 : i32
    %c0_i32_1 = arith.constant 0 : i32
    return %arg0, %c0_i32, %c0_i32_0 : i32, i32, i32
  }
}

</mosaic_0001>

<bundles_post_ra>
// kernel: tpu_custom_call.1
= control target key start
LH: loop header
LB: loop body
LE: loop exit
PB: predicated region body
PF: predicated region fallthrough
CT: control target
= control target key end

     0   :  { %s3534_s0 = inlined_call_operand.vmem [shape: f32[2,8,32], index: 0, kind: input, shape index: {}]   ;;  %s3535_s1 = inlined_call_operand.vmem [shape: f32[2,8,1], index: 1, kind: input, shape index: {}]   ;;  %s3536_s2 = inlined_call_operand.vmem [shape: f32[2,1,1,8], index: 2, kind: input, shape index: {}]   ;;  %s3537_s3 = inlined_call_operand.vmem [shape: f32[2,1,32], index: 3, kind: input, shape index: {}]   ;;  %s3538_s4 = inlined_call_operand.vmem [shape: f32[2,1,32], index: 4, kind: input, shape index: {}]   ;;  %s3539_s5 = inlined_call_operand.vmem [shape: bf16[2,32,96], index: 5, kind: input, shape index: {}]   ;;  %s3540_s6 = inlined_call_operand.vmem [shape: f32[2,1,96], index: 6, kind: input, shape index: {}]   ;;  %s3541_s7 = inlined_call_operand.vmem [shape: bf16[2,32,32], index: 7, kind: input, shape index: {}]   ;;  %s3542_s8 = inlined_call_operand.vmem [shape: f32[2,1,32], index: 8, kind: input, shape index: {}]   ;;  %s3543_s9 = inlined_call_operand.vmem [shape: f32[2,1,32], index: 9, kind: input, shape index: {}]   ;;  %s3544_s10 = inlined_call_operand.vmem [shape: f32[2,1,32], index: 10, kind: input, shape index: {}]   ;;  %s3545_s11 = inlined_call_operand.vmem [shape: bf16[2,32,64], index: 11, kind: input, shape index: {}]   ;;  %s3546_s12 = inlined_call_operand.hbm [shape: f32[2,1,64], index: 12, kind: input, shape index: {}]   ;;  %s3547_s13 = inlined_call_operand.vmem [shape: bf16[2,64,32], index: 13, kind: input, shape index: {}]   ;;  %s3548_s14 = inlined_call_operand.vmem [shape: f32[2,1,32], index: 14, kind: input, shape index: {}]   ;;  %s3549_s15 = inlined_call_operand.hbm [shape: f32[2,8,32], index: 15, kind: output, shape index: {}]  }
   0x1   :  { %3559 = sst [smem:[#allocation15_spill]] %s3534_s0 }
   0x2   :  { %3560 = sst [smem:[#allocation16_spill]] %s3536_s2 }
   0x3   :  { %3561 = sst [smem:[#allocation17_spill]] %s3539_s5 }
   0x4   :  { %3562 = sst [smem:[#allocation18_spill]] %s3541_s7 }
   0x5   :  { %3563 = sst [smem:[#allocation19_spill]] %s3546_s12 }
   0x6   :  { %3564 = sst [smem:[#allocation20_spill]] %s3549_s15 }
   0x7   :  { %20 = vsyncpa [#allocation3], 0 }
   0x8   :  { %22 = vsyncpa [#allocation3 + $0x1], 0 }
   0x9   :  { %23 = vsyncpa [#allocation4], 0  ;;  %s3005_s18 = smov 0   ;;  %s3007_s19 = smov 0  }
   0xa   :  { %s3009_s20 = smov 0   ;;  %s3011_s21 = smov 0  }
   0xb   :  { %s3013_s22 = smov 0   ;;  %s3015_s23 = smov 0  }
   0xc LB: > { %3565 = sst [smem:[#allocation8_spill]] %s2893_s19  ;;  %s3553_s24 = sadd.s32 4294967295, %s2909_s23   ;;  %s2909_s23 = sphi %s3015_s23, %s29_s23   ;;  %s2905_s22 = sphi %s3013_s22, %s3596_s22   ;;  %s2901_s21 = sphi %s3011_s21, %s3595_s21   ;;  %s2897_s20 = sphi %s3009_s20, %s3594_s20   ;;  %s2893_s19 = sphi %s3007_s19, %s3593_s19   ;;  %s2889_s18 = sphi %s3005_s18, %s3592_s18  }
   0xd   : > { %3566 = sst [smem:[#allocation9_spill]] %s2897_s20  ;;  %s38_s25 = sadd.s32 1, %s2905_s22 }
   0xe   : > { %3567 = sst [smem:[#allocation10_spill]] %s2905_s22  ;;  %p39_p0 = scmp.ge.s32.totalorder %s38_s25, 2 }
   0xf   : > { %3568 = sst [smem:[#allocation11_spill]] %s2909_s23  ;;  %s360_s26 = sadd.s32 1, %s2897_s20 }
  0x10   : > { %p367_p1 = scmp.ne.s32.totalorder %s2897_s20, %s2893_s19  ;;  %p368_p2 = scmp.eq.s32.totalorder %s2909_s23, 0 }
  0x11   : > { %s3598_s25 = smov (%p39_p0, %s38_s25), 0  ;;  %p373_p4 = scmp.ne.s32.totalorder %s2893_s19, %s2889_s18 }
  0x12   : > { %3569 = sst [smem:[#allocation12_spill]] %s3598_s25  ;;  %p3041_p3 = por %p368_p2, %p367_p1 }
  0x13   : > { %s357_s28 = ssub.s32 %s2905_s22, %s3598_s25  ;;  %p374_p5 = scmp.eq.s32.totalorder %s3553_s24, 0 }
  0x14   : > { %p358_p6 = scmp.eq.s32.totalorder %s357_s28, 0  ;;  %p2676_p8 = scmp.lt.s32.totalorder %s2909_s23, 2 }
  0x15   : > { %p3050_p7 = por %p374_p5, %p373_p4  ;;  %s561_s16 = sand.u32 1, %s2897_s20  }
  0x16   : > { %s3056_s30 = scalar_select %p358_p6, %s2897_s20, %s360_s26  }
  0x17   : > { %s2407_s17 = sshll.u32 %s2905_s22, 4  ;;  %s3573_s12 = sld [smem:[#allocation19_spill]] }
  0x18   : > { %3572 = sst [smem:[#allocation13_spill]] %s3056_s30  ;;  %s564_s18 = scalar_lea.vmem [#allocation2], %s561_s16 }
  0x19   : > { %s571_s28 = sshll.u32 %s564_s18, 4  ;;  %p3069_p9 = pnand %p2676_p8, %p3041_p3  ;;  %s3065_s28 = int_to_ptr.vmem [resolvable:$true] %s571_s28 }
  0x1a   : > { %s562_s2 = scalar_lea.sflag [#allocation3], %s561_s16 }
  0x1b   : > { %p2801_p13 = pneg %p3069_p9 }
  0x1d   : > { %s3063_s0 = scalar_lea.hbm %s3573_s12, %s2407_s17  ;;  %s2804_s27 = scalar_lea.hbm %s3573_s12, 32 }
  0x1e   : > { %s2799_s15 = scalar_lea.hbm %s3063_s0, 16  ;;  %p2805_p2 = scmp.lt.u32.totalorder %s3063_s0, %s3573_s12 }
  0x1f   : > { %p2800_p12 = scmp.ne.s32.totalorder %s3063_s0, %s2799_s15  ;;  %p2806_p3 = scmp.lt.u32.totalorder %s2804_s27, %s2799_s15 }
  0x20   : > { %p2808_p5 = scmp.lt.u32.totalorder %s2799_s15, %s3063_s0 }
  0x21   : > { %p2802_p0 = pnand %p2801_p13, %p2800_p12  ;;  %p2807_p4 = por %p2806_p3, %p2805_p2 }
  0x23   : > { %p2803_p1 = pneg %p2802_p0  ;;  %p2809_p6 = por %p2808_p5, %p2807_p4 }
  0x25   : > { %p2810_p8 = pnand %p2809_p6, %p2803_p1 }
  0x27   : > { %2813 = shalt.err (!%p2810_p8)
}
  0x28   : > { %s2814_s16 = scalar_lea.vmem %s3065_s28, 16  ;;  %s2911_s26 = smov [#allocation2]  }
  0x29   : > { %p2815_p12 = scmp.ne.s32.totalorder %s3065_s28, %s2814_s16  ;;  %s2819_s17 = sshll.u32 %s2911_s26, 4  ;;  %s2820_s17 = int_to_ptr.vmem [resolvable:$false] %s2819_s17 }
  0x2a   : > { %s2821_s25 = scalar_lea.vmem %s2820_s17, 32  ;;  %p2822_p11 = scmp.lt.s32.totalorder %s3065_s28, %s2820_s17 }
  0x2b   : > { %p2817_p0 = pnand %p2815_p12, %p2801_p13  ;;  %p2823_p2 = scmp.lt.s32.totalorder %s2821_s25, %s2814_s16 }
  0x2d   : > { %p2818_p10 = pneg %p2817_p0  ;;  %p2824_p3 = por %p2823_p2, %p2822_p11 }
  0x2f   : > { %p2825_p4 = pnand %p2824_p3, %p2818_p10 }
  0x31   : > { %2828 = shalt.err (!%p2825_p4)
}
  0x32   : > { %2675 = dma.hbm_to_vmem [thread:$0]  (!%p3069_p9), %s3063_s0, 16, %s3065_s28, %s562_s2  }
  0x33   : > { %p3575_p1 = scmp.lt.s32.totalorder %s2909_s23, 3  ;;  %p3576_p5 = scmp.ge.s32.totalorder %s2909_s23, 1 }
  0x35   : > { %p591_p13 = pnand %p3576_p5, %p3575_p1 }
  0x37   : > { %594 = sbr.rel (%p591_p13) target bundleno = 2958 (0xb8e), region = 80 }
  0x3e   : > { %s596_s15 = sand.u32 1, %s2893_s19  }
  0x3f   : > { %s597_s27 = scalar_lea.sflag [#allocation3], %s596_s15  ;;  %s3105_s18 = scalar_lea.vmem [#allocation2], %s596_s15 }
  0x40   : > { %3577 = sst [smem:[#allocation14_spill]] %s3105_s18 }
  0x41   : > { %2880 = dma.done.wait (%p3050_p7), %s597_s27, 16  }
  0x42   : > { %2882 = vsyncadd (%p3050_p7), %s597_s27, 4294967280  ;;  %p712_p10 = scmp.lt.s32.totalorder %s2901_s21, 1  ;;  %s3578_s5 = sld [smem:[#allocation17_spill]] }
  0x43   : > { %s3579_s7 = sld [smem:[#allocation18_spill]]  ;;  %p2417_p7 = scmp.ne.s32.totalorder %s2901_s21, 0 }
  0x44   : > { %s3113_s24 = scalar_select %p712_p10, %s2901_s21, 1 }
  0x45   : > { %758 = sbr.rel (%p2417_p7) target bundleno = 206 (0xce), region = 88  ;;  %v761_v0 = vld [vmem:[%s3535_s1] sm:$0xff] (!%p2417_p7)  ;;  %v2912_v1 = vmov (!%p2417_p7), 0   ;;  %v762_v2 = vld [vmem:[%s3535_s1 + $0x8] sm:$0xff] (!%p2417_p7)  ;;  %s3580_s12 = sld [smem:[#allocation15_spill]] (!%p2417_p7)  ;;  %vm775_vm0 = vcmask (!%p2417_p7), 261120  }
  0x46   : > { %s2478_s17 = sshll.u32 %s3113_s24, 4  ;;  %s736_s23 = scalar_lea.vmem %s3543_s9, %s3113_s24  ;;  %2740 = vset.pattern.permute.xlu0 (!%p2417_p7), %v2912_v1 }
  0x47   : > { %s739_s27 = scalar_lea.vmem %s3544_s10, %s3113_s24  ;;  %s2481_s22 = sshll.u32 %s3113_s24, 5  ;;  %765 = vperm.xlu0 (!%p2417_p7), %2740, %v761_v0  }
  0x48   : > { %s3131_s28 = scalar_lea.vmem %s3578_s5, %s2478_s17  ;;  %s3153_s5 = scalar_lea.vmem %s3545_s11, %s2478_s17 }
  0x49   : > { %s3136_s20 = scalar_lea.vmem %s3579_s7, %s2478_s17  ;;  %s752_s18 = scalar_lea.vmem %s3548_s14, %s3113_s24 }
  0x4a   : > { %s3163_s29 = scalar_lea.vmem %s3547_s13, %s2481_s22 }
  0x4b   : > { %770 = vperm.xlu0 (!%p2417_p7), %2740, %v762_v2   ;;  %v759_v3 = vld [vmem:[%s3580_s12] sm:$0xff] (!%p2417_p7)  ;;  %v760_v6 = vld [vmem:[%s3580_s12 + $0x8] sm:$0xff] (!%p2417_p7) }
  0xc6   : > { %v766_v4 = vpop.permute.xlu0 %765 }
  0xc7   : > { %v773_v5 = vmul.f32 %v766_v4, %v759_v3 }
  0xc9   : > { %776 = vst.msk [vmem:[#allocation5] sm:$0xff] %vm775_vm0, %v773_v5 }
  0xca   : > { %v771_v7 = vpop.permute.xlu0 %770 }
  0xcb   : > { %v774_v8 = vmul.f32 %v771_v7, %v760_v6 }
  0xcd   : > { %777 = vst.msk [vmem:[#allocation5 + $0x8] sm:$0xff] %vm775_vm0, %v774_v8 }
  0xce PF: > { %vm782_vm1 = vcmask 261120   ;;  %v2741_v23 = vld [vmem:[%s3131_s28] sm:$0xff]   ;;  %v2913_v24 = vmov 0.0   ;;  %v2742_v25 = vld [vmem:[%s3131_s28 + $0x8] sm:$0xff]   ;;  %vm2914_vm2 = vmmov 0   ;;  %s3581_s30 = scalar_lea.vmem %s3537_s3, %s3113_s24  ;;  %s3582_s26 = scalar_lea.vmem %s3538_s4, %s3113_s24  ;;  %vm914_vm3 = vcmask 64512  }
  0xcf   : > { %2534 = vmatprep.subr.bf16.mxu0 %v2913_v24  ;;  %2542 = vmatprep.subr.bf16.mxu1 %v2913_v24  ;;  %v2418_v34 = vld [vmem:[%s3581_s30] ss:$0 sm:$0xff]  ;;  %s3583_s25 = scalar_lea.vmem %s3540_s6, %s3113_s24  ;;  %s2915_s7 = smov 112   ;;  %vm1432_vm4 = vcmask 1043456   ;;  %vm1849_vm5 = vcmask 130048   ;;  %vm1852_vm6 = vcmask 195584  }
  0xd0   : > { %v3178_v9 = vld [vmem:[#allocation5] sm:$0xff]  ;;  %2535 = vmatpush3.bf16.msra.mxu0 %v2741_v23  ;;  %2538 = vmatprep.mubr.msk.bf16.mxu0 %vm2914_vm2, %v2913_v24  ;;  %v2419_v38 = vld [vmem:[%s3582_s26] ss:$0 sm:$0xff]  ;;  %s2916_s15 = smov 120   ;;  %s2917_s21 = smov 104   ;;  %vm2129_vm9 = vcmask 523264  }
  0xd1   : > { %v783_v11 = vsel %vm782_vm1, %v3178_v9, 0.0  ;;  %2536 = vmatprep.subr.bf16.mxu0 %v2913_v24  ;;  %2544 = vmatprep.mubr.msk.bf16.mxu1 %vm2914_vm2, %v2913_v24  ;;  %v2420_v43 = vld [vmem:[%s3583_s25] ss:$0 sm:$0xff]  ;;  %s2918_s0 = smov 96   ;;  %s3584_s30 = sld [smem:[#allocation16_spill]] }
  0xd2   : > { %784 = vadd.xlane.f32.xlu0 %v783_v11  ;;  %s2919_s26 = smov 64   ;;  %s2921_s16 = smov 8  }
  0xd3   : > { %s2922_s17 = smov 24   ;;  %s3586_s22 = sld [smem:[#allocation14_spill]] }
  0xd4   : > { %v3180_v10 = vld [vmem:[#allocation5 + $0x8] sm:$0xff]  ;;  %2537 = vmatpush3.bf16.msra.mxu0 %v2742_v25  ;;  %s2923_s19 = smov [#allocation5]  }
  0xd5   : > { %v786_v12 = vsel %vm782_vm1, %v3180_v10, 0.0  ;;  %2548 = vmatprep.subr.bf16.mxu0 %v2913_v24  ;;  %s2187_s2 = sshll.u32 %s2923_s19, 4  ;;  %s2188_s2 = int_to_ptr.vmem [resolvable:$true] %s2187_s2 }
  0xd6   : > { %787 = vadd.xlane.f32.xlu0 %v786_v12  ;;  %p2836_p12 = scmp.lt.s32.totalorder %s2188_s2, %s2188_s2 }
 0x15f   : > { %v785_v13 = vpop.xlane.xlu0 %784 }
 0x160   : > { %v790_v14 = vmul.f32 0.03125, %v785_v13 }
 0x162   : > { %v792_v15 = vsub.f32 %v3178_v9, %v790_v14 }
 0x163   : > { %v788_v16 = vpop.xlane.xlu0 %787 }
 0x164   : > { %v791_v17 = vmul.f32 0.03125, %v788_v16  ;;  %v794_v18 = vmul.f32 %v792_v15, %v792_v15 }
 0x166   : > { %v793_v19 = vsub.f32 %v3180_v10, %v791_v17  ;;  %v796_v20 = vsel %vm782_vm1, %v794_v18, 0.0  ;;  %v2440_v18 = vld [vmem:[%s3584_s30] ss:$0 sm:$0xff] }
 0x167   : > { %797 = vadd.xlane.f32.xlu1 %v796_v20 }
 0x168   : > { %v795_v21 = vmul.f32 %v793_v19, %v793_v19 }
 0x16a   : > { %v799_v22 = vsel %vm782_vm1, %v795_v21, 0.0 }
 0x16b   : > { %800 = vadd.xlane.f32.xlu1 %v799_v22 }
 0x1f4   : > { %v798_v26 = vpop.xlane.xlu1 %797 }
 0x1f5   : > { %v802_v27 = vmul.f32 0.03125, %v798_v26 }
 0x1f7   : > { %v804_v28 = vadd.f32 1e-05, %v802_v27 }
 0x1f8   : > { %v801_v29 = vpop.xlane.xlu1 %800 }
 0x1f9   : > { %2751 = vrsqrt.f32 %v804_v28  ;;  %v803_v30 = vmul.f32 0.03125, %v801_v29 }
 0x1fb   : > { %v805_v31 = vadd.f32 1e-05, %v803_v30 }
 0x1fd   : > { %2753 = vrsqrt.f32 %v805_v31 }
 0x203   : > { %v2752_v32 = vpop.eup %2751 }
 0x204   : > { %v808_v33 = vmul.f32 %v2752_v32, %v792_v15 }
 0x206   : > { %v816_v37 = vmul.f32 %v2418_v34, %v808_v33 }
 0x207   : > { %v2754_v35 = vpop.eup %2753 }
 0x208   : > { %v809_v36 = vmul.f32 %v2754_v35, %v793_v19  ;;  %v824_v40 = vadd.f32 %v2419_v38, %v816_v37 }
 0x20a   : > { %v817_v39 = vmul.f32 %v2418_v34, %v809_v36 }
 0x20c   : > { %v825_v41 = vadd.f32 %v2419_v38, %v817_v39 }
 0x20e   : > { %v826_v42 = vpack.c.bf16 %v825_v41, %v824_v40  ;;  %v2441_v40 = vld [vmem:[%s3584_s30 + $0x1] ss:$0 sm:$0xff] }
 0x210   : > { %2539 = vmatmul.mubr.msk.bf16.vlgmr.msra.gmra.mrb[0].mxu0 %vm782_vm1, %v826_v42 }
 0x211   : > { %2550 = vmatprep.mubr.msk.bf16.mxu0 %vm2914_vm2, %v2913_v24 }
 0x2e3   : > { %v887_v44 = vpop.f32.mrb[0].mxu0 }
 0x2e4   : > { %v888_v45 = vadd.f32 %v2420_v43, %v887_v44  ;;  %v2540_v46 = vpop.f32.mrb[1].mxu0 }
 0x2e5   : > { %v890_v47 = vpop.f32.mrb[2].mxu0 }
 0x2e6   : > { %v3218_v48 = vpack.c.bf16 %v888_v45, %v888_v45  ;;  %v891_v49 = vadd.f32 %v2420_v43, %v890_v47  ;;  %v2541_v50 = vpop.f32.mrb[3].mxu0 }
 0x2e8   : > { %904 = vrot.lane.b32.xlu1 %v3218_v48, %s2915_s7  ;;  %900 = vrot.lane.b32.xlu0 %v3218_v48, %s2916_s15  ;;  %v3222_v51 = vpack.c.bf16 %v891_v49, %v891_v49 }
 0x2ec   : > { %908 = vrot.lane.b32.xlu1 %v3218_v48, %s2917_s21  ;;  %906 = vrot.lane.b32.xlu0 %v3222_v51, %s2915_s7 }
 0x2f0   : > { %912 = vrot.lane.b32.xlu0 %v3218_v48, %s2918_s0  ;;  %902 = vrot.lane.b32.xlu1 %v3222_v51, %s2916_s15  ;;  %s3585_s15 = scalar_lea.vmem %s3542_s8, %s3113_s24 }
 0x2f4   : > { %910 = vrot.lane.b32.xlu1 %v3222_v51, %s2917_s21 }
 0x35a   : > { %v905_v52 = vpop.permute.xlu1 %904  ;;  %v901_v53 = vpop.permute.xlu0 %900 }
 0x35b   : > { %v3229_v54 = vcombine.low %v905_v52, %v905_v52  ;;  %v3231_v55 = vcombine.low %v901_v53, %v901_v53 }
 0x35d   : > { %1013 = vrot.lane.b32.xlu0 %v3229_v54, %s2918_s0  ;;  %963 = vrot.lane.b32.xlu1 %v3231_v55, %s2918_s0 }
 0x35e   : > { %v909_v56 = vpop.permute.xlu1 %908  ;;  %v907_v57 = vpop.permute.xlu0 %906 }
 0x35f   : > { %v3235_v58 = vcombine.low %v909_v56, %v909_v56  ;;  %v3239_v61 = vcombine.low %v907_v57, %v907_v57 }
 0x361   : > { %1111 = vrot.lane.b32.xlu0 %v3222_v51, %s2918_s0  ;;  %1063 = vrot.lane.b32.xlu1 %v3235_v58, %s2918_s0 }
 0x362   : > { %v913_v59 = vpop.permute.xlu0 %912  ;;  %v903_v60 = vpop.permute.xlu1 %902 }
 0x363   : > { %v3241_v62 = vcombine.low %v903_v60, %v903_v60  ;;  %v919_v63 = vsel %vm914_vm3, %v913_v59, 0 }
 0x364   : > { %2543 = vmatpush3.bf16.xpose.msra.mxu1 %v919_v63 }
 0x365   : > { %1211 = vrot.lane.b32.xlu0 %v3239_v61, %s2918_s0  ;;  %1161 = vrot.lane.b32.xlu1 %v3241_v62, %s2918_s0 }
 0x366   : > { %v911_v0 = vpop.permute.xlu1 %910  ;;  %2554 = vmatprep.subr.bf16.mxu1 %v2913_v24 }
 0x367   : > { %v3247_v1 = vcombine.low %v911_v0, %v911_v0 }
 0x369   : > { %1261 = vrot.lane.b32.xlu1 %v3247_v1, %s2918_s0 }
 0x36b   : > { %2545 = vmatmul.mubr.msk.bf16.vlgmr.msra.gmra.mrb[0].mxu1 %vm914_vm3, %v3218_v48 }
 0x36c   : > { %2556 = vmatprep.mubr.msk.bf16.mxu1 %vm2914_vm2, %v2913_v24 }
 0x3cf   : > { %v1014_v2 = vpop.permute.xlu0 %1013  ;;  %v964_v3 = vpop.permute.xlu1 %963 }
 0x3d0   : > { %v1019_v4 = vsel %vm914_vm3, %v1014_v2, 0  ;;  %v969_v5 = vsel %vm914_vm3, %v964_v3, 0 }
 0x3d1   : > { %2549 = vmatpush3.bf16.xpose.msra.mxu0 %v969_v5  ;;  %2555 = vmatpush3.bf16.xpose.msra.mxu1 %v1019_v4 }
 0x3d2   : > { %2560 = vmatprep.subr.bf16.mxu0 %v2913_v24  ;;  %2566 = vmatprep.subr.bf16.mxu1 %v2913_v24 }
 0x3d3   : > { %v1112_v6 = vpop.permute.xlu0 %1111  ;;  %v1064_v7 = vpop.permute.xlu1 %1063 }
 0x3d4   : > { %v1117_v8 = vsel %vm914_vm3, %v1112_v6, 0  ;;  %v1069_v11 = vsel %vm914_vm3, %v1064_v7, 0 }
 0x3d7   : > { %v1212_v12 = vpop.permute.xlu0 %1211  ;;  %v1162_v13 = vpop.permute.xlu1 %1161 }
 0x3d8   : > { %2551 = vmatmul.mubr.msk.bf16.vlgmr.msra.gmra.mrb[4].mxu0 %vm914_vm3, %v901_v53  ;;  %2557 = vmatmul.mubr.msk.bf16.vlgmr.msra.gmra.mrb[4].mxu1 %vm914_vm3, %v905_v52  ;;  %v1217_v14 = vsel %vm914_vm3, %v1212_v12, 0  ;;  %v1167_v15 = vsel %vm914_vm3, %v1162_v13, 0 }
 0x3d9   : > { %2561 = vmatpush3.bf16.xpose.msra.mxu0 %v1069_v11  ;;  %2567 = vmatpush3.bf16.xpose.msra.mxu1 %v1117_v8 }
 0x3da   : > { %2562 = vmatprep.mubr.msk.bf16.mxu0 %vm2914_vm2, %v2913_v24  ;;  %2568 = vmatprep.mubr.msk.bf16.mxu1 %vm2914_vm2, %v2913_v24 }
 0x3db   : > { %2572 = vmatprep.subr.bf16.mxu0 %v2913_v24  ;;  %2578 = vmatprep.subr.bf16.mxu1 %v2913_v24  ;;  %v1262_v16 = vpop.permute.xlu1 %1261 }
 0x3dc   : > { %v1267_v17 = vsel %vm914_vm3, %v1262_v16, 0 }
 0x3e0   : > { %2563 = vmatmul.mubr.msk.bf16.vlgmr.msra.gmra.mrb[8].mxu0 %vm914_vm3, %v909_v56  ;;  %2569 = vmatmul.mubr.msk.bf16.vlgmr.msra.gmra.mrb[8].mxu1 %vm914_vm3, %v3222_v51 }
 0x3e1   : > { %2573 = vmatpush3.bf16.xpose.msra.mxu0 %v1167_v15  ;;  %2579 = vmatpush3.bf16.xpose.msra.mxu1 %v1217_v14 }
 0x3e2   : > { %2574 = vmatprep.mubr.msk.bf16.mxu0 %vm2914_vm2, %v2913_v24  ;;  %2580 = vmatprep.mubr.msk.bf16.mxu1 %vm2914_vm2, %v2913_v24 }
 0x3e3   : > { %2584 = vmatprep.subr.bf16.mxu0 %v2913_v24  ;;  %2590 = vmatprep.subr.bf16.mxu1 %v2913_v24 }
 0x3e8   : > { %2575 = vmatmul.mubr.msk.bf16.vlgmr.msra.gmra.mrb[12].mxu0 %vm914_vm3, %v903_v60  ;;  %2581 = vmatmul.mubr.msk.bf16.vlgmr.msra.gmra.mrb[12].mxu1 %vm914_vm3, %v907_v57 }
 0x3e9   : > { %2585 = vmatpush3.bf16.xpose.msra.mxu0 %v1267_v17  ;;  %2586 = vmatprep.mubr.msk.bf16.mxu0 %vm2914_vm2, %v2913_v24 }
 0x3ea   : > { %2596 = vmatprep.subr.bf16.mxu0 %v2913_v24  ;;  %2592 = vmatprep.mubr.msk.bf16.mxu1 %vm2914_vm2, %v2913_v24 }
 0x3f0   : > { %2587 = vmatmul.mubr.msk.bf16.vlgmr.msra.gmra.mrb[16].mxu0 %vm914_vm3, %v911_v0 }
 0x3f1   : > { %2598 = vmatprep.mubr.msk.bf16.mxu0 %vm2914_vm2, %v2913_v24 }
 0x43e   : > { %v955_v19 = vpop.f32.mrb[0].mxu1 }
 0x43f   : > { %v1323_v20 = vadd.f32 %v2440_v18, %v955_v19  ;;  %v2546_v21 = vpop.f32.mrb[1].mxu1 }
 0x440   : > { %v958_v22 = vpop.f32.mrb[2].mxu1 }
 0x441   : > { %v2547_v23 = vpop.f32.mrb[3].mxu1  ;;  %v1331_v25 = vsel %vm914_vm3, %v1323_v20, -inf }
 0x442   : > { %1332 = vmax.xlane.f32.xlu0 %v1331_v25 }
 0x4ab   : > { %v1005_v26 = vpop.f32.mrb[4].mxu0  ;;  %v1055_v27 = vpop.f32.mrb[4].mxu1 }
 0x4ac   : > { %v3294_v28 = vadd.f32 %v2440_v18, %v1005_v26  ;;  %v3296_v29 = vadd.f32 %v2440_v18, %v1055_v27  ;;  %v2552_v30 = vpop.f32.mrb[5].mxu0  ;;  %v2558_v31 = vpop.f32.mrb[5].mxu1 }
 0x4ad   : > { %v1008_v32 = vpop.f32.mrb[6].mxu0  ;;  %v1058_v33 = vpop.f32.mrb[6].mxu1 }
 0x4ae   : > { %v2553_v34 = vpop.f32.mrb[7].mxu0  ;;  %v2559_v35 = vpop.f32.mrb[7].mxu1  ;;  %v1337_v36 = vsel %vm914_vm3, %v3296_v29, -inf  ;;  %v1334_v37 = vsel %vm914_vm3, %v3294_v28, -inf }
 0x4af   : > { %1338 = vmax.xlane.f32.xlu0 %v1337_v36  ;;  %1335 = vmax.xlane.f32.xlu1 %v1334_v37 }
 0x4b3   : > { %v1105_v38 = vpop.f32.mrb[8].mxu0  ;;  %v1153_v39 = vpop.f32.mrb[8].mxu1 }
 0x4b4   : > { %v3305_v41 = vadd.f32 %v2440_v18, %v1105_v38  ;;  %v2564_v42 = vpop.f32.mrb[9].mxu0  ;;  %v2570_v43 = vpop.f32.mrb[9].mxu1  ;;  %v3307_v46 = vadd.f32 %v2441_v40, %v1153_v39 }
 0x4b5   : > { %v1108_v44 = vpop.f32.mrb[10].mxu0  ;;  %v1156_v45 = vpop.f32.mrb[10].mxu1 }
 0x4b6   : > { %v2565_v47 = vpop.f32.mrb[11].mxu0  ;;  %v2571_v49 = vpop.f32.mrb[11].mxu1  ;;  %v1340_v50 = vsel %vm914_vm3, %v3305_v41, -inf  ;;  %v1343_v52 = vsel %vm914_vm3, %v3307_v46, -inf }
 0x4b7   : > { %1341 = vmax.xlane.f32.xlu0 %v1340_v50 }
 0x4bb   : > { %v1253_v53 = vpop.f32.mrb[12].mxu1  ;;  %1344 = vmax.xlane.f32.xlu0 %v1343_v52  ;;  %v1203_v56 = vpop.f32.mrb[12].mxu0 }
 0x4bc   : > { %v3313_v57 = vadd.f32 %v2441_v40, %v1253_v53  ;;  %v3315_v59 = vadd.f32 %v2441_v40, %v1203_v56  ;;  %v2576_v60 = vpop.f32.mrb[13].mxu0  ;;  %v2582_v63 = vpop.f32.mrb[13].mxu1 }
 0x4bd   : > { %v1206_v0 = vpop.f32.mrb[14].mxu0  ;;  %v1256_v2 = vpop.f32.mrb[14].mxu1 }
 0x4be   : > { %v2577_v3 = vpop.f32.mrb[15].mxu0  ;;  %v2583_v4 = vpop.f32.mrb[15].mxu1  ;;  %v1349_v5 = vsel %vm914_vm3, %v3313_v57, -inf  ;;  %v1346_v6 = vsel %vm914_vm3, %v3315_v59, -inf }
 0x4bf   : > { %1350 = vmax.xlane.f32.xlu0 %v1349_v5  ;;  %1347 = vmax.xlane.f32.xlu1 %v1346_v6 }
 0x4c3   : > { %v1303_v7 = vpop.f32.mrb[16].mxu0 }
 0x4c4   : > { %v2588_v8 = vpop.f32.mrb[17].mxu0  ;;  %v3329_v17 = vadd.f32 %v2441_v40, %v1303_v7 }
 0x4c5   : > { %v1306_v11 = vpop.f32.mrb[18].mxu0 }
 0x4c6   : > { %v2589_v12 = vpop.f32.mrb[19].mxu0 }
 0x4cf   : > { %v1333_v13 = vpop.xlane.xlu0 %1332 }
 0x4d0   : > { %1476 = vrot.lane.b32.xlu1 %v3231_v55, %s2919_s26  ;;  %v1355_v14 = vsub.f32 %v1323_v20, %v1333_v13  ;;  %v1352_v55 = vsel %vm914_vm3, %v3329_v17, -inf }
 0x4d2   : > { %v1363_v15 = vmul.f32 1.442695, %v1355_v14 }
 0x4d4   : > { %1524 = vrot.lane.b32.xlu1 %v3229_v54, %s2919_s26  ;;  %2755 = vpow2.f32 %v1363_v15 }
 0x4d5   : > { %1427 = vrot.lane.b32.xlu0 %v3218_v48, %s2919_s26 }
 0x4de   : > { %v3327_v16 = vpop.eup %2755 }
 0x4df   : > { %v1379_v18 = vsel %vm914_vm3, %v3327_v16, 0.0 }
 0x4f4   : > { %1380 = vadd.xlane.f32.xlu0 %v1379_v18 }
 0x4f8   : > { %1353 = vmax.xlane.f32.xlu1 %v1352_v55 }
 0x509   : > { %1572 = vrot.lane.b32.xlu1 %v3235_v58, %s2919_s26 }
 0x53c   : > { %v1339_v48 = vpop.xlane.xlu0 %1338  ;;  %v1336_v54 = vpop.xlane.xlu1 %1335 }
 0x53d   : > { %v1357_v19 = vsub.f32 %v3296_v29, %v1339_v48  ;;  %v1356_v20 = vsub.f32 %v3294_v28, %v1336_v54 }
 0x53f   : > { %v1367_v21 = vmul.f32 1.442695, %v1357_v19  ;;  %v1365_v22 = vmul.f32 1.442695, %v1356_v20 }
 0x541   : > { %2757 = vpow2.f32 %v1367_v21 }
 0x542   : > { %2759 = vpow2.f32 %v1365_v22 }
 0x544   : > { %v1342_v23 = vpop.xlane.xlu0 %1341 }
 0x545   : > { %v1358_v36 = vsub.f32 %v3305_v41, %v1342_v23 }
 0x547   : > { %v1369_v39 = vmul.f32 1.442695, %v1358_v36 }
 0x548   : > { %v1345_v25 = vpop.xlane.xlu0 %1344 }
 0x549   : > { %v1359_v35 = vsub.f32 %v3307_v46, %v1345_v25 }
 0x54b   : > { %v3339_v26 = vpop.eup %2757  ;;  %v1371_v37 = vmul.f32 1.442695, %v1359_v35 }
 0x54c   : > { %v3341_v27 = vpop.eup %2759  ;;  %v1351_v30 = vpop.xlane.xlu0 %1350  ;;  %v1385_v58 = vsel %vm914_vm3, %v3339_v26, 0.0 }
 0x54d   : > { %v1348_v31 = vpop.xlane.xlu1 %1347  ;;  %1386 = vadd.xlane.f32.xlu0 %v1385_v58  ;;  %v1382_v29 = vsel %vm914_vm3, %v3341_v27, 0.0  ;;  %v1361_v38 = vsub.f32 %v3313_v57, %v1351_v30  ;;  %2761 = vpow2.f32 %v1371_v37 }
 0x54e   : > { %1383 = vadd.xlane.f32.xlu1 %v1382_v29  ;;  %v1360_v40 = vsub.f32 %v3315_v59, %v1348_v31  ;;  %2763 = vpow2.f32 %v1369_v39 }
 0x54f   : > { %v1375_v42 = vmul.f32 1.442695, %v1361_v38 }
 0x550   : > { %v1428_v28 = vpop.permute.xlu0 %1427  ;;  %v1373_v43 = vmul.f32 1.442695, %v1360_v40 }
 0x551   : > { %v1477_v32 = vpop.permute.xlu1 %1476  ;;  %v1434_v33 = vsel %vm1432_vm4, %v1428_v28, 0  ;;  %2765 = vpow2.f32 %v1375_v42 }
 0x552   : > { %v1482_v34 = vsel %vm1432_vm4, %v1477_v32, 0  ;;  %2591 = vmatpush3.bf16.msra.mxu1 %v1434_v33  ;;  %2767 = vpow2.f32 %v1373_v43 }
 0x553   : > { %2597 = vmatpush3.bf16.msra.mxu0 %v1482_v34  ;;  %2602 = vmatprep.subr.bf16.mxu1 %v2913_v24 }
 0x554   : > { %2608 = vmatprep.subr.bf16.mxu0 %v2913_v24 }
 0x55f   : > { %1668 = vrot.lane.b32.xlu1 %v3241_v62, %s2919_s26  ;;  %v3359_v62 = vpop.eup %2761 }
 0x560   : > { %v3361_v44 = vpop.eup %2763  ;;  %v1391_v41 = vsel %vm914_vm3, %v3359_v62, 0.0 }
 0x561   : > { %v3365_v46 = vpop.eup %2765  ;;  %v1388_v47 = vsel %vm914_vm3, %v3361_v44, 0.0 }
 0x562   : > { %v3369_v49 = vpop.eup %2767  ;;  %v1397_v52 = vsel %vm914_vm3, %v3365_v46, 0.0 }
 0x563   : > { %1620 = vrot.lane.b32.xlu0 %v3222_v51, %s2919_s26  ;;  %v1525_v51 = vpop.permute.xlu1 %1524  ;;  %v1394_v56 = vsel %vm914_vm3, %v3369_v49, 0.0 }
 0x564   : > { %v1530_v0 = vsel %vm1432_vm4, %v1525_v51, 0 }
 0x581   : > { %v1381_v45 = vpop.xlane.xlu0 %1380 }
 0x582   : > { %2769 = vrcp.f32 %v1381_v45  ;;  %1392 = vadd.xlane.f32.xlu0 %v1391_v41 }
 0x583   : > { %1389 = vadd.xlane.f32.xlu1 %v1388_v47 }
 0x585   : > { %v1354_v50 = vpop.xlane.xlu1 %1353 }
 0x586   : > { %v1362_v53 = vsub.f32 %v3329_v17, %v1354_v50  ;;  %1398 = vadd.xlane.f32.xlu0 %v1397_v52  ;;  %v2743_v50 = vld [vmem:[%s3136_s20] sm:$0xff]  }
 0x587   : > { %1395 = vadd.xlane.f32.xlu1 %v1394_v56 }
 0x588   : > { %v1377_v57 = vmul.f32 1.442695, %v1362_v53 }
 0x589   : > { %v1573_v4 = vpop.permute.xlu1 %1572 }
 0x58a   : > { %2771 = vpow2.f32 %v1377_v57 }
 0x58c   : > { %v2770_v59 = vpop.eup %2769 }
 0x58d   : > { %v1411_v60 = vmul.f32 %v2770_v59, %v3327_v16  ;;  %v2744_v59 = vld [vmem:[%s3136_s20 + $0x8] sm:$0xff]   ;;  %s2920_s20 = smov 16  }
 0x58f   : > { %v1419_v63 = vpack.c.bf16 %v1411_v60, %v1411_v60 }
 0x591   : > { %2593 = vmatmul.mubr.msk.bf16.vlgmr.msra.gmra.mrb[16].mxu1 %vm914_vm3, %v1419_v63 }
 0x592   : > { %2603 = vmatpush3.bf16.msra.mxu1 %v1530_v0  ;;  %2604 = vmatprep.mubr.msk.bf16.mxu1 %vm2914_vm2, %v2913_v24 }
 0x593   : > { %2614 = vmatprep.subr.bf16.mxu1 %v2913_v24 }
 0x594   : > { %v3382_v2 = vpop.eup %2771 }
 0x595   : > { %v1400_v3 = vsel %vm914_vm3, %v3382_v2, 0.0 }
 0x596   : > { %1401 = vadd.xlane.f32.xlu1 %v1400_v3 }
 0x59c   : > { %1716 = vrot.lane.b32.xlu0 %v3239_v61, %s2919_s26  ;;  %v1578_v61 = vsel %vm1432_vm4, %v1573_v4, 0 }
 0x5a7   : > { %1764 = vrot.lane.b32.xlu1 %v3247_v1, %s2919_s26 }
 0x5da   : > { %v1387_v5 = vpop.xlane.xlu0 %1386 }
 0x5db   : > { %2773 = vrcp.f32 %v1387_v5  ;;  %v1384_v6 = vpop.xlane.xlu1 %1383 }
 0x5dc   : > { %2775 = vrcp.f32 %v1384_v6 }
 0x5de   : > { %v1621_v13 = vpop.permute.xlu0 %1620 }
 0x5df   : > { %v1626_v16 = vsel %vm1432_vm4, %v1621_v13, 0  ;;  %v1669_v1 = vpop.permute.xlu1 %1668 }
 0x5e0   : > { %v1674_v31 = vsel %vm1432_vm4, %v1669_v1, 0 }
 0x5e5   : > { %v2774_v7 = vpop.eup %2773 }
 0x5e6   : > { %v2776_v8 = vpop.eup %2775  ;;  %v1413_v11 = vmul.f32 %v2774_v7, %v3339_v26 }
 0x5e7   : > { %v1412_v12 = vmul.f32 %v2776_v8, %v3341_v27 }
 0x5e8   : > { %v1421_v14 = vpack.c.bf16 %v1413_v11, %v1413_v11 }
 0x5e9   : > { %v1420_v15 = vpack.c.bf16 %v1412_v12, %v1412_v12 }
 0x5ea   : > { %2605 = vmatmul.mubr.msk.bf16.vlgmr.msra.gmra.mrb[20].mxu1 %vm914_vm3, %v1421_v14 }
 0x5eb   : > { %2599 = vmatmul.mubr.msk.bf16.vlgmr.msra.gmra.mrb[20].mxu0 %vm914_vm3, %v1420_v15  ;;  %2615 = vmatpush3.bf16.msra.mxu1 %v1626_v16 }
 0x5ec   : > { %2609 = vmatpush3.bf16.msra.mxu0 %v1578_v61  ;;  %2610 = vmatprep.mubr.msk.bf16.mxu0 %vm2914_vm2, %v2913_v24 }
 0x5ed   : > { %2616 = vmatprep.mubr.msk.bf16.mxu1 %vm2914_vm2, %v2913_v24  ;;  %2620 = vmatprep.subr.bf16.mxu0 %v2913_v24 }
 0x5ee   : > { %2626 = vmatprep.subr.bf16.mxu1 %v2913_v24 }
 0x60f   : > { %v1393_v17 = vpop.xlane.xlu0 %1392 }
 0x610   : > { %2777 = vrcp.f32 %v1393_v17  ;;  %v1390_v18 = vpop.xlane.xlu1 %1389 }
 0x611   : > { %2779 = vrcp.f32 %v1390_v18 }
 0x613   : > { %v1399_v55 = vpop.xlane.xlu0 %1398 }
 0x614   : > { %2781 = vrcp.f32 %v1399_v55  ;;  %v1396_v48 = vpop.xlane.xlu1 %1395 }
 0x615   : > { %2783 = vrcp.f32 %v1396_v48 }
 0x617   : > { %v1717_v22 = vpop.permute.xlu0 %1716 }
 0x618   : > { %v1722_v30 = vsel %vm1432_vm4, %v1717_v22, 0  ;;  %v2454_v22 = vld [vmem:[%s3585_s15] ss:$0 sm:$0xff] }
 0x61a   : > { %v2778_v54 = vpop.eup %2777 }
 0x61b   : > { %v2780_v19 = vpop.eup %2779  ;;  %v1415_v20 = vmul.f32 %v2778_v54, %v3359_v62 }
 0x61c   : > { %v1414_v21 = vmul.f32 %v2780_v19, %v3361_v44 }
 0x61d   : > { %v1423_v23 = vpack.c.bf16 %v1415_v20, %v1415_v20 }
 0x61e   : > { %v2782_v25 = vpop.eup %2781  ;;  %v1422_v26 = vpack.c.bf16 %v1414_v21, %v1414_v21 }
 0x61f   : > { %v2784_v27 = vpop.eup %2783  ;;  %2617 = vmatmul.mubr.msk.bf16.vlgmr.msra.gmra.mrb[24].mxu1 %vm914_vm3, %v1423_v23  ;;  %v1417_v58 = vmul.f32 %v2782_v25, %v3365_v46 }
 0x620   : > { %2611 = vmatmul.mubr.msk.bf16.vlgmr.msra.gmra.mrb[24].mxu0 %vm914_vm3, %v1422_v26  ;;  %2627 = vmatpush3.bf16.msra.mxu1 %v1722_v30  ;;  %v1416_v29 = vmul.f32 %v2784_v27, %v3369_v49 }
 0x621   : > { %2621 = vmatpush3.bf16.msra.mxu0 %v1674_v31  ;;  %2622 = vmatprep.mubr.msk.bf16.mxu0 %vm2914_vm2, %v2913_v24  ;;  %v1425_v32 = vpack.c.bf16 %v1417_v58, %v1417_v58 }
 0x622   : > { %2628 = vmatprep.mubr.msk.bf16.mxu1 %vm2914_vm2, %v2913_v24  ;;  %2632 = vmatprep.subr.bf16.mxu0 %v2913_v24  ;;  %v1424_v33 = vpack.c.bf16 %v1416_v29, %v1416_v29 }
 0x623   : > { %v1402_v28 = vpop.xlane.xlu1 %1401  ;;  %2638 = vmatprep.subr.bf16.mxu1 %v2913_v24 }
 0x624   : > { %2785 = vrcp.f32 %v1402_v28 }
 0x627   : > { %2629 = vmatmul.mubr.msk.bf16.vlgmr.msra.gmra.mrb[28].mxu1 %vm914_vm3, %v1425_v32  ;;  %v1765_v34 = vpop.permute.xlu1 %1764 }
 0x628   : > { %2623 = vmatmul.mubr.msk.bf16.vlgmr.msra.gmra.mrb[28].mxu0 %vm914_vm3, %v1424_v33  ;;  %v1770_v35 = vsel %vm1432_vm4, %v1765_v34, 0  ;;  %2642 = vmatprep.mubr.msk.bf16.mxu1 %vm2914_vm2, %v2913_v24 }
 0x629   : > { %2633 = vmatpush3.bf16.msra.mxu0 %v1770_v35  ;;  %2634 = vmatprep.mubr.msk.bf16.mxu0 %vm2914_vm2, %v2913_v24 }
 0x62a   : > { %2646 = vmatprep.subr.bf16.mxu0 %v2913_v24  ;;  %2639 = vmatpush3.bf16.msra.mxu1 %v2743_v50  ;;  %v2458_v50 = vld [vmem:[%s736_s23] ss:$0 sm:$0xff]  ;;  %s3587_s23 = sld [smem:[#allocation11_spill]] }
 0x62b   : > { %2640 = vmatprep.subr.bf16.mxu1 %v2913_v24 }
 0x62e   : > { %v2786_v36 = vpop.eup %2785  ;;  %2641 = vmatpush3.bf16.msra.mxu1 %v2744_v59 }
 0x62f   : > { %v1418_v37 = vmul.f32 %v2786_v36, %v3382_v2  ;;  %2654 = vmatprep.subr.bf16.mxu1 %v2913_v24 }
 0x630   : > { %s3588_s26 = sadd.s32 4294967295, %s3587_s23  }
 0x631   : > { %v1426_v38 = vpack.c.bf16 %v1418_v37, %v1418_v37  ;;  %p3486_p9 = scmp.eq.s32.totalorder %s3588_s26, 1 }
 0x633   : > { %2635 = vmatmul.mubr.msk.bf16.vlgmr.msra.gmra.mrb[32].mxu0 %vm914_vm3, %v1426_v38 }
 0x634   : > { %2650 = vmatprep.mubr.msk.bf16.mxu0 %vm2914_vm2, %v2913_v24 }
 0x664   : > { %v1470_v39 = vpop.f32.mrb[16].mxu1 }
 0x665   : > { %v2594_v40 = vpop.f32.mrb[17].mxu1 }
 0x666   : > { %v1473_v42 = vpop.f32.mrb[18].mxu1 }
 0x667   : > { %v2595_v43 = vpop.f32.mrb[19].mxu1  ;;  %v2745_v42 = vld [vmem:[%s3153_s5] sm:$0xff]  }
 0x668   : > { %2647 = vmatpush3.bf16.msra.mxu0 %v2745_v42  ;;  %v2746_v43 = vld [vmem:[%s3153_s5 + $0x8] sm:$0xff]  }
 0x669   : > { %2648 = vmatprep.subr.bf16.mxu0 %v2913_v24 }
 0x66c   : > { %2649 = vmatpush3.bf16.msra.mxu0 %v2746_v43 }
 0x6bd   : > { %v1566_v62 = vpop.f32.mrb[20].mxu1 }
 0x6be   : > { %v1518_v44 = vpop.f32.mrb[20].mxu0  ;;  %v2606_v51 = vpop.f32.mrb[21].mxu1 }
 0x6bf   : > { %v2600_v45 = vpop.f32.mrb[21].mxu0  ;;  %v1569_v41 = vpop.f32.mrb[22].mxu1 }
 0x6c0   : > { %v1521_v46 = vpop.f32.mrb[22].mxu0  ;;  %v2607_v47 = vpop.f32.mrb[23].mxu1 }
 0x6c1   : > { %v2601_v49 = vpop.f32.mrb[23].mxu0 }
 0x6f2   : > { %v1662_v52 = vpop.f32.mrb[24].mxu1 }
 0x6f3   : > { %v1614_v53 = vpop.f32.mrb[24].mxu0  ;;  %v2484_v56 = vpack.c.bf16 %v1662_v52, %v1470_v39  ;;  %v2618_v57 = vpop.f32.mrb[25].mxu1 }
 0x6f4   : > { %v2612_v60 = vpop.f32.mrb[25].mxu0  ;;  %v1665_v63 = vpop.f32.mrb[26].mxu1  ;;  %v2459_v57 = vld [vmem:[%s739_s27] ss:$0 sm:$0xff] }
 0x6f5   : > { %v1617_v0 = vpop.f32.mrb[26].mxu0  ;;  %v2619_v2 = vpop.f32.mrb[27].mxu1 }
 0x6f6   : > { %v2613_v3 = vpop.f32.mrb[27].mxu0  ;;  %v2747_v2 = vld [vmem:[%s3163_s29] sm:$0xff]  }
 0x6f7   : > { %v2748_v3 = vld [vmem:[%s3163_s29 + $0x8] sm:$0xff]  }
 0x6fa   : > { %v1758_v4 = vpop.f32.mrb[28].mxu1 }
 0x6fb   : > { %v1710_v5 = vpop.f32.mrb[28].mxu0  ;;  %v2486_v6 = vpack.c.bf16 %v1758_v4, %v1566_v62  ;;  %v2630_v7 = vpop.f32.mrb[29].mxu1  ;;  %v2749_v4 = vld [vmem:[%s3163_s29 + $0x10] sm:$0xff]  }
 0x6fc   : > { %v2485_v8 = vpack.c.bf16 %v1710_v5, %v1518_v44  ;;  %v2624_v11 = vpop.f32.mrb[29].mxu0  ;;  %v1761_v12 = vpop.f32.mrb[30].mxu1  ;;  %v2750_v5 = vld [vmem:[%s3163_s29 + $0x18] sm:$0xff]  }
 0x6fd   : > { %v1713_v13 = vpop.f32.mrb[30].mxu0  ;;  %v2631_v14 = vpop.f32.mrb[31].mxu1  ;;  %1837 = vrot.lane.b32.xlu1 %v2486_v6, %s2920_s20  ;;  %v2460_v6 = vld [vmem:[%s3586_s22] ss:$0 sm:$0xff] }
 0x6fe   : > { %1830 = vrot.lane.b32.xlu0 %v2485_v8, %s2921_s16  ;;  %v2625_v15 = vpop.f32.mrb[31].mxu0 }
 0x706   : > { %v1806_v16 = vpop.f32.mrb[32].mxu0 }
 0x707   : > { %v2487_v61 = vpack.c.bf16 %v1806_v16, %v1614_v53  ;;  %v2636_v1 = vpop.f32.mrb[33].mxu0 }
 0x708   : > { %v1809_v17 = vpop.f32.mrb[34].mxu0 }
 0x709   : > { %1844 = vrot.lane.b32.xlu0 %v2487_v61, %s2922_s17  ;;  %v2637_v18 = vpop.f32.mrb[35].mxu0 }
 0x76f   : > { %v1838_v48 = vpop.permute.xlu1 %1837 }
 0x770   : > { %v1831_v55 = vpop.permute.xlu0 %1830 }
 0x771   : > { %v1848_v54 = vsel %vm914_vm3, %v2484_v56, %v1831_v55 }
 0x772   : > { %v1851_v19 = vsel %vm1849_vm5, %v1848_v54, %v1838_v48 }
 0x77b   : > { %v1845_v20 = vpop.permute.xlu0 %1844 }
 0x77c   : > { %v1854_v21 = vsel %vm1852_vm6, %v1851_v19, %v1845_v20 }
 0x77d   : > { %2643 = vmatmul.mubr.msk.bf16.vlgmr.msra.gmra.mrb[32].mxu1 %vm782_vm1, %v1854_v21 }
 0x77e   : > { %2662 = vmatprep.mubr.msk.bf16.mxu1 %vm2914_vm2, %v2913_v24  ;;  %2655 = vmatpush3.bf16.msra.mxu1 %v2747_v2  ;;  %v2468_v2 = vld [vmem:[%s752_s18] ss:$0 sm:$0xff]  ;;  %s2829_s18 = scalar_lea.vmem %s2188_s2, 256 }
 0x77f   : > { %2656 = vmatprep.subr.bf16.mxu1 %v2913_v24  ;;  %p2830_p11 = scmp.ne.s32.totalorder %s2188_s2, %s2829_s18  ;;  %p2837_p0 = scmp.lt.s32.totalorder %s2829_s18, %s2829_s18 }
 0x781   : > { %p2831_p6 = pnand %p2830_p11, %p3486_p9  ;;  %p2838_p2 = por %p2837_p0, %p2836_p12 }
 0x782   : > { %2657 = vmatpush3.bf16.msra.mxu1 %v2748_v3 }
 0x783   : > { %2658 = vmatprep.subr.bf16.mxu1 %v2913_v24  ;;  %p2832_p8 = pneg %p2831_p6 }
 0x785   : > { %p2839_p3 = pnand %p2838_p2, %p2832_p8 }
 0x786   : > { %2659 = vmatpush3.bf16.msra.mxu1 %v2749_v4 }
 0x787   : > { %2660 = vmatprep.subr.bf16.mxu1 %v2913_v24 }
 0x78a   : > { %2661 = vmatpush3.bf16.msra.mxu1 %v2750_v5 }
 0x850   : > { %v1914_v23 = vpop.f32.mrb[32].mxu1 }
 0x851   : > { %v1915_v25 = vadd.f32 %v2454_v22, %v1914_v23  ;;  %v2644_v26 = vpop.f32.mrb[33].mxu1 }
 0x852   : > { %v1917_v27 = vpop.f32.mrb[34].mxu1 }
 0x853   : > { %v3443_v30 = vadd.f32 %v1915_v25, %v3178_v9  ;;  %v1918_v31 = vadd.f32 %v2454_v22, %v1917_v27  ;;  %v2645_v58 = vpop.f32.mrb[35].mxu1 }
 0x855   : > { %v3446_v29 = vadd.f32 %v1918_v31, %v3180_v10  ;;  %v1925_v28 = vsel %vm782_vm1, %v3443_v30, 0.0 }
 0x856   : > { %1926 = vadd.xlane.f32.xlu1 %v1925_v28 }
 0x857   : > { %v1928_v32 = vsel %vm782_vm1, %v3446_v29, 0.0 }
 0x858   : > { %1929 = vadd.xlane.f32.xlu0 %v1928_v32 }
 0x8e3   : > { %v1927_v33 = vpop.xlane.xlu1 %1926 }
 0x8e4   : > { %v1931_v34 = vmul.f32 0.03125, %v1927_v33 }
 0x8e5   : > { %v1930_v35 = vpop.xlane.xlu0 %1929 }
 0x8e6   : > { %v1933_v9 = vsub.f32 %v3443_v30, %v1931_v34  ;;  %v1932_v36 = vmul.f32 0.03125, %v1930_v35 }
 0x8e8   : > { %v1934_v37 = vsub.f32 %v3446_v29, %v1932_v36  ;;  %v1935_v10 = vmul.f32 %v1933_v9, %v1933_v9 }
 0x8ea   : > { %v1937_v38 = vsel %vm782_vm1, %v1935_v10, 0.0  ;;  %v1936_v39 = vmul.f32 %v1934_v37, %v1934_v37 }
 0x8eb   : > { %1938 = vadd.xlane.f32.xlu0 %v1937_v38 }
 0x8ec   : > { %v1940_v40 = vsel %vm782_vm1, %v1936_v39, 0.0 }
 0x8ef   : > { %1941 = vadd.xlane.f32.xlu0 %v1940_v40 }
 0x978   : > { %v1939_v62 = vpop.xlane.xlu0 %1938 }
 0x979   : > { %v1943_v44 = vmul.f32 0.03125, %v1939_v62 }
 0x97b   : > { %v1945_v51 = vadd.f32 1e-05, %v1943_v44 }
 0x97c   : > { %v1942_v45 = vpop.xlane.xlu0 %1941 }
 0x97d   : > { %2787 = vrsqrt.f32 %v1945_v51  ;;  %v1944_v41 = vmul.f32 0.03125, %v1942_v45 }
 0x97f   : > { %v1946_v46 = vadd.f32 1e-05, %v1944_v41 }
 0x981   : > { %2789 = vrsqrt.f32 %v1946_v46 }
 0x987   : > { %v2788_v47 = vpop.eup %2787 }
 0x988   : > { %v1949_v49 = vmul.f32 %v2788_v47, %v1933_v9 }
 0x98a   : > { %v1957_v53 = vmul.f32 %v2458_v50, %v1949_v49 }
 0x98b   : > { %v2790_v52 = vpop.eup %2789 }
 0x98c   : > { %v1950_v56 = vmul.f32 %v2790_v52, %v1934_v37  ;;  %v1965_v60 = vadd.f32 %v2459_v57, %v1957_v53 }
 0x98e   : > { %v1958_v59 = vmul.f32 %v2458_v50, %v1950_v56 }
 0x990   : > { %v1966_v63 = vadd.f32 %v2459_v57, %v1958_v59 }
 0x992   : > { %v1967_v0 = vpack.c.bf16 %v1966_v63, %v1965_v60 }
 0x994   : > { %2651 = vmatmul.mubr.msk.bf16.vlgmr.msra.gmra.mrb[36].mxu0 %vm782_vm1, %v1967_v0 }
 0xa67   : > { %v2028_v7 = vpop.f32.mrb[36].mxu0 }
 0xa68   : > { %v2029_v8 = vadd.f32 %v2460_v6, %v2028_v7  ;;  %v2652_v11 = vpop.f32.mrb[37].mxu0 }
 0xa69   : > { %v2031_v12 = vpop.f32.mrb[38].mxu0 }
 0xa6a   : > { %v2035_v13 = vand.u32 2147483647, %v2029_v8  ;;  %v2032_v14 = vadd.f32 %v2460_v6, %v2031_v12  ;;  %v2653_v15 = vpop.f32.mrb[39].mxu0  ;;  %vm2077_vm7 = vcmp.ge.f32.partialorder %v2029_v8, 0.0  ;;  %v2083_v56 = vmul.f32 0.5, %v2029_v8 }
 0xa6c   : > { %v2037_v16 = vmul.f32 0.70710677, %v2035_v13  ;;  %v2036_v61 = vand.u32 2147483647, %v2032_v14  ;;  %vm2078_vm8 = vcmp.ge.f32.partialorder %v2032_v14, 0.0  ;;  %v2084_v57 = vmul.f32 0.5, %v2032_v14 }
 0xa6e   : > { %v2039_v1 = vmul.f32 0.3275911, %v2037_v16  ;;  %v2038_v17 = vmul.f32 0.70710677, %v2036_v61  ;;  %v2065_v24 = vsub.f32 0.0, %v2037_v16 }
 0xa70   : > { %v2041_v18 = vadd.f32 1.0, %v2039_v1  ;;  %v2040_v55 = vmul.f32 0.3275911, %v2038_v17  ;;  %v2066_v54 = vsub.f32 0.0, %v2038_v17  ;;  %v2067_v20 = vmul.f32 %v2065_v24, %v2037_v16 }
 0xa72   : > { %2791 = vrcp.f32 %v2041_v18  ;;  %v2042_v48 = vadd.f32 1.0, %v2040_v55  ;;  %v2068_v25 = vmul.f32 %v2066_v54, %v2038_v17  ;;  %v2069_v26 = vmul.f32 1.442695, %v2067_v20 }
 0xa74   : > { %2793 = vrcp.f32 %v2042_v48  ;;  %v2071_v32 = vmul.f32 1.442695, %v2068_v25 }
 0xa75   : > { %2795 = vpow2.f32 %v2069_v26 }
 0xa76   : > { %2797 = vpow2.f32 %v2071_v32 }
 0xa7c   : > { %v2792_v19 = vpop.eup %2791 }
 0xa7d   : > { %v2047_v21 = vmul.f32 1.0614054, %v2792_v19 }
 0xa7e   : > { %v2794_v22 = vpop.eup %2793 }
 0xa7f   : > { %v2464_v23 = vadd.f32 -1.4531521, %v2047_v21  ;;  %v2048_v27 = vmul.f32 1.0614054, %v2794_v22  ;;  %v2796_v42 = vpop.eup %2795 }
 0xa80   : > { %v2798_v51 = vpop.eup %2797 }
 0xa81   : > { %v2051_v31 = vmul.f32 %v2792_v19, %v2464_v23  ;;  %v2465_v58 = vadd.f32 -1.4531521, %v2048_v27 }
 0xa83   : > { %v2053_v28 = vadd.f32 1.4214138, %v2051_v31  ;;  %v2052_v33 = vmul.f32 %v2794_v22, %v2465_v58 }
 0xa85   : > { %v2055_v34 = vmul.f32 %v2792_v19, %v2053_v28  ;;  %v2054_v35 = vadd.f32 1.4214138, %v2052_v33 }
 0xa87   : > { %v2466_v9 = vadd.f32 -0.28449672, %v2055_v34  ;;  %v2056_v36 = vmul.f32 %v2794_v22, %v2054_v35 }
 0xa89   : > { %v2059_v37 = vmul.f32 %v2792_v19, %v2466_v9  ;;  %v2467_v10 = vadd.f32 -0.28449672, %v2056_v36 }
 0xa8b   : > { %v2061_v38 = vadd.f32 0.2548296, %v2059_v37  ;;  %v2060_v39 = vmul.f32 %v2794_v22, %v2467_v10 }
 0xa8d   : > { %v2063_v40 = vmul.f32 %v2792_v19, %v2061_v38  ;;  %v2062_v43 = vadd.f32 0.2548296, %v2060_v39 }
 0xa8f   : > { %v2073_v62 = vmul.f32 %v2796_v42, %v2063_v40  ;;  %v2064_v44 = vmul.f32 %v2794_v22, %v2062_v43 }
 0xa91   : > { %v2075_v45 = vsub.f32 1.0, %v2073_v62  ;;  %v2074_v41 = vmul.f32 %v2798_v51, %v2064_v44 }
 0xa93   : > { %v2079_v46 = vsub.f32 0.0, %v2075_v45  ;;  %v2076_v47 = vsub.f32 1.0, %v2074_v41 }
 0xa95   : > { %v2081_v49 = vsel %vm2077_vm7, %v2075_v45, %v2079_v46  ;;  %v2080_v50 = vsub.f32 0.0, %v2076_v47 }
 0xa96   : > { %v2085_v52 = vadd.f32 1.0, %v2081_v49 }
 0xa97   : > { %v2082_v53 = vsel %vm2078_vm8, %v2076_v47, %v2080_v50 }
 0xa98   : > { %v2086_v59 = vadd.f32 1.0, %v2082_v53  ;;  %v2087_v60 = vmul.f32 %v2085_v52, %v2083_v56 }
 0xa9a   : > { %v2088_v63 = vmul.f32 %v2086_v59, %v2084_v57 }
 0xa9c   : > { %v2089_v0 = vpack.c.bf16 %v2088_v63, %v2087_v60 }
 0xa9e   : > { %2663 = vmatmul.mubr.msk.bf16.vlgmr.msra.gmra.mrb[36].mxu1 %vm2129_vm9, %v2089_v0 }
 0xb71   : > { %v2167_v3 = vpop.f32.mrb[36].mxu1 }
 0xb72   : > { %v2168_v4 = vadd.f32 %v2468_v2, %v2167_v3  ;;  %v2664_v5 = vpop.f32.mrb[37].mxu1 }
 0xb73   : > { %v2170_v6 = vpop.f32.mrb[38].mxu1 }
 0xb74   : > { %v2174_v7 = vadd.f32 %v2168_v4, %v3443_v30  ;;  %v2171_v8 = vadd.f32 %v2468_v2, %v2170_v6  ;;  %v2665_v11 = vpop.f32.mrb[39].mxu1 }
 0xb76   : > { %2176 = vst.msk [vmem:[#allocation5] sm:$0xff] %vm782_vm1, %v2174_v7  ;;  %v2175_v12 = vadd.f32 %v2171_v8, %v3446_v29 }
 0xb78   : > { %2177 = vst.msk [vmem:[#allocation5 + $0x8] sm:$0xff] %vm782_vm1, %v2175_v12 }
 0xb79   : > { %2842 = shalt.err (!%p2839_p3)
}
 0xb7a   : > { %s3590_s25 = sld [smem:[#allocation20_spill]] }
 0xb80   : > { %s2843_s7 = scalar_lea.hbm %s3590_s25, 256 }
 0xb81   : > { %p2844_p4 = scmp.ne.s32.totalorder %s3590_s25, %s2843_s7  ;;  %p2849_p13 = scmp.lt.u32.totalorder %s2843_s7, %s3590_s25 }
 0xb83   : > { %p2845_p1 = pnand %p2844_p4, %p3486_p9 }
 0xb85   : > { %p2846_p5 = pneg %p2845_p1 }
 0xb87   : > { %p2851_p10 = pnand %p2849_p13, %p2846_p5 }
 0xb89   : > { %2854 = shalt.err (!%p2851_p10)
}
 0xb8a   : > { %s2924_s28 = smov 128  }
 0xb8b   : > { %2669 = dma.vmem_to_hbm [thread:$0]  (%p3486_p9), %s2188_s2, 256, %s3590_s25, [#allocation4], %s2924_s28, %s2924_s28, %s2921_s16  }
 0xb8c   : > { %2884 = dma.done.wait (%p3486_p9), [#allocation4], 256  }
 0xb8d   : > { %2886 = vsyncadd (%p3486_p9), [#allocation4], 4294967040 }
 0xb8e PF: > { %s3591_s27 = sld [smem:[#allocation11_spill]]  ;;  %s3592_s18 = sld [smem:[#allocation8_spill]] }
 0xb8f   : > { %s3593_s19 = sld [smem:[#allocation9_spill]]  ;;  %s3594_s20 = sld [smem:[#allocation13_spill]] }
 0xb90   : > { %s3595_s21 = sld [smem:[#allocation10_spill]]  ;;  %s3596_s22 = sld [smem:[#allocation12_spill]] }
 0xb94   : > { %s29_s23 = sadd.s32 1, %s3591_s27  }
 0xb95   : > { %p26_p7 = scmp.ge.s32.totalorder %s29_s23, 4  }
 0xb97   :  { %28 = sbr.rel (!%p26_p7) target bundleno = 12 (0xc), region = 164 }
 0xb9e   :  { %2203 = vsyncpa [#allocation3], 1 }
 0xb9f   :  { %2205 = vsyncpa [#allocation3 + $0x1], 1 }
 0xba0   :  { %2206 = vsyncpa [#allocation4], 1 }
 0xba1   :  { %2208 = vsyncpa [#allocation4 + $0x1], 1 }

</bundles_post_ra>
